<compile_context>
chip_gen: v7x
topology: tpu7x:2x2x1
jax: 0.10.0
libtpu: 0.0.40
codegen_flags: <defaults>
</compile_context>

<pallas_src>
import functools

import jax
import jax.numpy as jnp
from jax.experimental import pallas as pl
from jax.experimental.pallas import tpu as pltpu


def mha_kernel(q_ref, k_ref, v_ref, mask_ref, wq_ref, bq_ref, wo_ref, bo_ref,
               out_ref, attn_ref, *, n_head, d_head):
    # Q projection for this query block: (tq, d_hidn) @ (d_hidn, H*Dh) on the
    # MXU with f32 accumulation.  The 1/sqrt(d_head) softmax scale is already
    # folded into W_Q / b_Q on the host.
    q_proj = jnp.dot(q_ref[0], wq_ref[...],
                     preferred_element_type=jnp.float32) + bq_ref[...]
    tq = q_proj.shape[0]

    # Head-major layouts so one batched einsum covers all heads.  K/V arrive
    # already projected and head-major from the host; only the small
    # (tq, H*Dh) Q block is relaid out per step.
    qh = q_proj.astype(jnp.bfloat16).reshape(tq, n_head, d_head).transpose(1, 0, 2)
    kh = k_ref[0]                                        # (H, S, Dh) bf16
    vh = v_ref[0]                                        # (H, S, Dh) bf16

    # scores = (Q / sqrt(Dh)) @ K^T, then masked_fill(mask, -1e9); f32 math
    # (v5e's VPU/EUP have no bf16 path, so keep the softmax region f32).
    scores = jnp.einsum("hqd,hkd->hqk", qh, kh,
                        preferred_element_type=jnp.float32)
    masked = mask_ref[0] != 0                            # (tq, S) bool
    scores = jnp.where(masked[None, :, :], jnp.float32(-1e9), scores)

    # Softmax over keys in f32; divide -> EUP reciprocal + VPU multiply.
    # (approx-reciprocal error is far below the bf16 rounding of the
    #  returned probabilities.)
    m = jnp.max(scores, axis=-1, keepdims=True)
    e = jnp.exp(scores - m)
    denom = jnp.sum(e, axis=-1, keepdims=True)
    probs = e * pl.reciprocal(denom, approx=True)        # (H, tq, S) f32

    # Lane-dense bf16 writeback: halves the O(B*H*S^2) HBM traffic vs f32.
    attn_ref[0] = probs.astype(attn_ref.dtype)

    # context = P @ V per head (contraction over S), concat heads, then the
    # output projection: (tq, H*Dh) @ (H*Dh, d_hidn) + bias on the MXU.
    ctx = jnp.einsum("hqk,hkd->hqd", probs.astype(jnp.bfloat16), vh,
                     preferred_element_type=jnp.float32)
    context = ctx.transpose(1, 0, 2).reshape(tq, n_head * d_head)
    out = jnp.dot(context.astype(jnp.bfloat16), wo_ref[...],
                  preferred_element_type=jnp.float32) + bo_ref[...]
    # TODO(synk): nn.Dropout (attention + output) is identity in eval mode.
    out_ref[0] = out.astype(out_ref.dtype)


def _vmem_capacity_bytes():
    try:
        return int(pltpu.get_tpu_info().vmem_capacity_bytes)
    except Exception:
        return 64 * 2**20   # conservative fallback: v7x per-TensorCore VMEM


def _per_step_vmem_bytes(tq, s_pad, n_head, d_head, d_hidn):
    """Rough per-grid-step VMEM footprint (blocks x buffers + live temps)."""
    hdh = n_head * d_head
    attn_block = 2 * n_head * tq * s_pad * 2               # bf16 out, 2 buffers
    softmax_tmp = n_head * tq * s_pad * (4 + 4 + 2)         # scores+exp f32, probs bf16
    mask_block = 2 * tq * s_pad * 1                         # int8, 2 buffers
    q_block = 2 * tq * d_hidn * 2                           # bf16, 2 buffers
    kv_blocks = 2 * n_head * s_pad * d_head * 2             # bf16, single-buffered
    weights = 2 * (d_hidn * hdh + hdh * d_hidn) + 4 * (hdh + d_hidn)
    out_block = 2 * tq * d_hidn * 4                         # f32, 2 buffers
    ctx_tmp = n_head * tq * d_head * 4 + tq * hdh * 4
    return (attn_block + softmax_tmp + mask_block + q_block + kv_blocks
            + weights + out_block + ctx_tmp)


def _pick_q_block(s_pad, n_head, d_head, d_hidn, budget):
    """Largest q-block in (512, 256, 128) whose footprint fits the budget."""
    candidates = [t for t in (512, 256, 128) if s_pad % t == 0] or [s_pad]
    est = _per_step_vmem_bytes(candidates[-1], s_pad, n_head, d_head, d_hidn)
    for tq in candidates:
        est = _per_step_vmem_bytes(tq, s_pad, n_head, d_head, d_hidn)
        if est <= budget:
            return tq, est
    return candidates[-1], est


def _build_mha_call(*, B, nq, tq, s_pad, n_head, d_head, d_hidn,
                    vmem_limit, single_buffer):
    hdh = n_head * d_head
    if single_buffer:
        # Grid-invariant / per-batch operands: one VMEM buffer is enough; the
        # second pipeline buffer would be pure VMEM waste.
        def inv_spec(shape, imap):
            return pl.BlockSpec(shape, imap, pipeline_mode=pl.Buffered(1))
    else:
        inv_spec = pl.BlockSpec

    kernel = functools.partial(mha_kernel, n_head=n_head, d_head=d_head)
    return pl.pallas_call(
        kernel,
        out_shape=(
            jax.ShapeDtypeStruct((B, s_pad, d_hidn), jnp.float32),
            jax.ShapeDtypeStruct((B, n_head, s_pad, s_pad), jnp.bfloat16),
        ),
        grid_spec=pltpu.PrefetchScalarGridSpec(
            num_scalar_prefetch=0,
            grid=(B, nq),
            in_specs=[
                pl.BlockSpec((1, tq, d_hidn), lambda b, qi: (b, qi, 0)),            # Q
                inv_spec((1, n_head, s_pad, d_head), lambda b, qi: (b, 0, 0, 0)),   # K heads
                inv_spec((1, n_head, s_pad, d_head), lambda b, qi: (b, 0, 0, 0)),   # V heads
                pl.BlockSpec((1, tq, s_pad), lambda b, qi: (b, qi, 0)),             # mask
                inv_spec((d_hidn, hdh), lambda b, qi: (0, 0)),                      # W_Q (scaled)
                inv_spec((1, hdh), lambda b, qi: (0, 0)),                           # b_Q (scaled)
                inv_spec((hdh, d_hidn), lambda b, qi: (0, 0)),                      # W_O
                inv_spec((1, d_hidn), lambda b, qi: (0, 0)),                        # b_O
            ],
            out_specs=(
                pl.BlockSpec((1, tq, d_hidn), lambda b, qi: (b, qi, 0)),
                pl.BlockSpec((1, n_head, tq, s_pad), lambda b, qi: (b, 0, qi, 0)),
            ),
        ),
        # No cross-step state anymore (K/V projection hoisted to the host), so
        # both grid axes are independent -> megacore can shard either axis.
        compiler_params=pltpu.CompilerParams(
            dimension_semantics=("parallel", "parallel"),
            vmem_limit_bytes=vmem_limit),
    )


def multi_head_attention(Q, K, V, attn_mask, params, *, n_head, d_head):
    """Q, K, V: (B, S, d_hidn) f32; attn_mask: (B, S, S), truthy = masked."""
    B, S, d_hidn = Q.shape
    hdh = n_head * d_head
    cdt = jnp.bfloat16

    # ---- host-side prep (plain XLA) ----------------------------------------
    # Fold the 1/sqrt(d_head) softmax scale into W_Q / b_Q (free at trace
    # time; removes a full VPU pass over the (H, tq, S) scores in the kernel).
    scale = 1.0 / (d_head ** 0.5)
    wq = (params["wq"].T * scale).astype(cdt)               # (d_hidn, hdh)
    bq = (params["bq"] * scale).reshape(1, hdh).astype(jnp.float32)
    wo = params["wo"].T.astype(cdt)                         # (hdh, d_hidn)
    bo = params["bo"].reshape(1, d_hidn).astype(jnp.float32)

    # K/V projections hoisted out of the kernel (f32 GEMMs), handed to the
    # kernel already head-major (B, H, S, Dh): constant per batch element,
    # so there is no per-step relayout and no qi-ordering dependency.
    k_proj = K @ params["wk"].T + params["bk"]
    v_proj = V @ params["wv"].T + params["bv"]
    kh = k_proj.reshape(B, S, n_head, d_head).transpose(0, 2, 1, 3).astype(cdt)
    vh = v_proj.reshape(B, S, n_head, d_head).transpose(0, 2, 1, 3).astype(cdt)

    Qc = Q.astype(cdt)
    mask_i8 = attn_mask.astype(jnp.int8)                    # 1 byte/elem

    # Pad long, oddly-sized sequences to a multiple of 128 (padded keys are
    # masked) instead of falling back to a single S-sized block.
    s_pad = S
    if S > 128 and S % 128 != 0:
        s_pad = ((S + 127) // 128) * 128
        pad = s_pad - S
        Qc = jnp.pad(Qc, ((0, 0), (0, pad), (0, 0)))
        kh = jnp.pad(kh, ((0, 0), (0, 0), (0, pad), (0, 0)))
        vh = jnp.pad(vh, ((0, 0), (0, 0), (0, pad), (0, 0)))
        mask_i8 = jnp.pad(mask_i8, ((0, 0), (0, pad), (0, pad)),
                          constant_values=1)

    # Generation-aware tiling: largest q-block whose per-step footprint fits
    # this chip's VMEM, plus an explicit scoped-VMEM limit for the compiler.
    cap = _vmem_capacity_bytes()
    tq, est = _pick_q_block(s_pad, n_head, d_head, d_hidn, budget=int(0.6 * cap))
    nq = s_pad // tq
    vmem_limit = int(min(max(est + (8 << 20), 32 << 20), int(0.8 * cap)))

    args = (Qc, kh, vh, mask_i8, wq, bq, wo, bo)
    kwargs = dict(B=B, nq=nq, tq=tq, s_pad=s_pad, n_head=n_head,
                  d_head=d_head, d_hidn=d_hidn, vmem_limit=vmem_limit)
    try:
        out, attn_prob = _build_mha_call(single_buffer=True, **kwargs)(*args)
    except Exception:
        # Fallback for jax builds without BlockSpec(pipeline_mode=...).
        out, attn_prob = _build_mha_call(single_buffer=False, **kwargs)(*args)

    if s_pad != S:
        out = out[:, :S, :]
        attn_prob = attn_prob[:, :, :S, :S]
    # TODO(synk): for very long S a flash-style online-softmax variant that
    # never materializes attn_prob would turn this kernel fully MXU-bound.
    return out, attn_prob


def reference_mha(Q, K, V, attn_mask, params, *, n_head, d_head):
    """Pure-JAX f32 reference mirroring the PyTorch forward (eval mode)."""
    B, S, d_hidn = Q.shape
    qp = Q @ params["wq"].T + params["bq"]
    kp = K @ params["wk"].T + params["bk"]
    vp = V @ params["wv"].T + params["bv"]
    qs = qp.reshape(B, S, n_head, d_head).transpose(0, 2, 1, 3)
    ks = kp.reshape(B, S, n_head, d_head).transpose(0, 2, 1, 3)
    vs = vp.reshape(B, S, n_head, d_head).transpose(0, 2, 1, 3)
    scores = jnp.einsum("bhqd,bhkd->bhqk", qs, ks) / (d_head ** 0.5)
    mask = attn_mask[:, None, :, :]
    scores = jnp.where(mask, -1e9, scores)
    probs = jax.nn.softmax(scores, axis=-1)
    ctx = jnp.einsum("bhqk,bhkd->bhqd", probs, vs)
    ctx = ctx.transpose(0, 2, 1, 3).reshape(B, S, n_head * d_head)
    out = ctx @ params["wo"].T + params["bo"]
    return out, probs


if __name__ == "__main__":
    # Small config: batch=2, seq=8, d_hidn=32, n_head=4, d_head=8.
    B, S, d_hidn, n_head, d_head = 2, 8, 32, 4, 8
    hdh = n_head * d_head

    key = jax.random.PRNGKey(0)
    keys = jax.random.split(key, 12)

    params = {
        "wq": jax.random.normal(keys[0], (hdh, d_hidn), jnp.float32) * 0.05,
        "bq": jax.random.normal(keys[1], (hdh,), jnp.float32) * 0.05,
        "wk": jax.random.normal(keys[2], (hdh, d_hidn), jnp.float32) * 0.05,
        "bk": jax.random.normal(keys[3], (hdh,), jnp.float32) * 0.05,
        "wv": jax.random.normal(keys[4], (hdh, d_hidn), jnp.float32) * 0.05,
        "bv": jax.random.normal(keys[5], (hdh,), jnp.float32) * 0.05,
        "wo": jax.random.normal(keys[6], (d_hidn, hdh), jnp.float32) * 0.05,
        "bo": jax.random.normal(keys[7], (d_hidn,), jnp.float32) * 0.05,
    }

    Q = jax.random.normal(keys[8], (B, S, d_hidn), jnp.float32)
    K = jax.random.normal(keys[9], (B, S, d_hidn), jnp.float32)
    V = jax.random.normal(keys[10], (B, S, d_hidn), jnp.float32)
    # Key-padding style mask: mask out the last 2 key positions.
    key_pad = jnp.arange(S) >= (S - 2)                 # (S,)
    attn_mask = jnp.broadcast_to(key_pad[None, None, :], (B, S, S))

    out, attn_prob = multi_head_attention(
        Q, K, V, attn_mask, params, n_head=n_head, d_head=d_head)
    out = jax.block_until_ready(out)
    attn_prob = jax.block_until_ready(attn_prob)

    ref_out, ref_prob = reference_mha(
        Q, K, V, attn_mask, params, n_head=n_head, d_head=d_head)

    assert out.shape == (B, S, d_hidn)
    assert attn_prob.shape == (B, n_head, S, S)
    # bf16 MXU inputs, bf16 attn_prob writeback and approx reciprocal ->
    # compare against the f32 reference with a bf16-appropriate tolerance.
    assert jnp.allclose(out, ref_out, atol=2e-2, rtol=2e-2), \
        float(jnp.max(jnp.abs(out - ref_out)))
    ap = attn_prob.astype(jnp.float32)
    assert jnp.allclose(ap, ref_prob, atol=2e-2, rtol=2e-2), \
        float(jnp.max(jnp.abs(ap - ref_prob)))

    print("KERNEL_OK")
</pallas_src>

<mosaic_0001>
module attributes {stable_mosaic.version = 11 : i64} {
  func.func @mha_kernel(%arg0: i32, %arg1: i32, %arg2: memref<1x8x32xbf16, #tpu.memory_space<vmem>>, %arg3: memref<1x4x8x8xbf16, #tpu.memory_space<vmem>>, %arg4: memref<1x4x8x8xbf16, #tpu.memory_space<vmem>>, %arg5: memref<1x8x8xi8, #tpu.memory_space<vmem>>, %arg6: memref<32x32xbf16, #tpu.memory_space<vmem>>, %arg7: memref<1x32xf32, #tpu.memory_space<vmem>>, %arg8: memref<32x32xbf16, #tpu.memory_space<vmem>>, %arg9: memref<1x32xf32, #tpu.memory_space<vmem>>, %arg10: memref<1x8x32xf32, #tpu.memory_space<vmem>>, %arg11: memref<1x4x8x8xbf16, #tpu.memory_space<vmem>>) attributes {dimension_semantics = [#tpu.dimension_semantics<parallel>, #tpu.dimension_semantics<parallel>], iteration_bounds = array<i64: 2, 1>, scalar_prefetch = 0 : i64, scratch_operands = 0 : i64, tpu.core_type = #tpu.core_type<tc>, window_params = [{transform_indices = @transform_0, window_bounds = array<i64: 1, 8, 32>}, {pipeline_mode = #tpu.pipeline_mode<synchronous>, transform_indices = @transform_1, window_bounds = array<i64: 1, 4, 8, 8>}, {pipeline_mode = #tpu.pipeline_mode<synchronous>, transform_indices = @transform_2, window_bounds = array<i64: 1, 4, 8, 8>}, {transform_indices = @transform_3, window_bounds = array<i64: 1, 8, 8>}, {pipeline_mode = #tpu.pipeline_mode<synchronous>, transform_indices = @transform_4, window_bounds = array<i64: 32, 32>}, {pipeline_mode = #tpu.pipeline_mode<synchronous>, transform_indices = @transform_5, window_bounds = array<i64: 1, 32>}, {pipeline_mode = #tpu.pipeline_mode<synchronous>, transform_indices = @transform_6, window_bounds = array<i64: 32, 32>}, {pipeline_mode = #tpu.pipeline_mode<synchronous>, transform_indices = @transform_7, window_bounds = array<i64: 1, 32>}, {transform_indices = @transform_8, window_bounds = array<i64: 1, 8, 32>}, {transform_indices = @transform_9, window_bounds = array<i64: 1, 4, 8, 8>}]} {
    %c0 = arith.constant 0 : index
    %c0_0 = arith.constant 0 : index
    %c0_1 = arith.constant 0 : index
    %0 = vector.load %arg2[%c0, %c0_0, %c0_1] : memref<1x8x32xbf16, #tpu.memory_space<vmem>>, vector<1x8x32xbf16>
    %1 = vector.shape_cast %0 : vector<1x8x32xbf16> to vector<8x32xbf16>
    %c0_2 = arith.constant 0 : index
    %c0_3 = arith.constant 0 : index
    %2 = vector.load %arg6[%c0_2, %c0_3] : memref<32x32xbf16, #tpu.memory_space<vmem>>, vector<32x32xbf16>
    %cst = arith.constant dense<0.000000e+00> : vector<8x32xf32>
    %3 = tpu.matmul %1, %2, %cst {dimension_numbers = #tpu.dot_dimension_numbers<[1], [0], [0], [1], [0, 0, 1, 1], [], []>} : vector<8x32xbf16>, vector<32x32xbf16>, vector<8x32xf32> -> vector<8x32xf32>
    %c0_4 = arith.constant 0 : index
    %c0_5 = arith.constant 0 : index
    %4 = vector.load %arg7[%c0_4, %c0_5] : memref<1x32xf32, #tpu.memory_space<vmem>>, vector<1x32xf32>
    %5 = vector.broadcast %4 : vector<1x32xf32> to vector<8x32xf32>
    %6 = arith.addf %3, %5 : vector<8x32xf32>
    %7 = arith.truncf %6 : vector<8x32xf32> to vector<8x32xbf16>
    %8 = vector.shape_cast %7 : vector<8x32xbf16> to vector<8x4x8xbf16>
    %9 = tpu.transpose %8, [1, 0, 2] : vector<8x4x8xbf16> -> vector<4x8x8xbf16>
    %c0_6 = arith.constant 0 : index
    %c0_7 = arith.constant 0 : index
    %c0_8 = arith.constant 0 : index
    %c0_9 = arith.constant 0 : index
    %10 = vector.load %arg3[%c0_6, %c0_7, %c0_8, %c0_9] : memref<1x4x8x8xbf16, #tpu.memory_space<vmem>>, vector<1x4x8x8xbf16>
    %11 = vector.shape_cast %10 : vector<1x4x8x8xbf16> to vector<4x8x8xbf16>
    %c0_10 = arith.constant 0 : index
    %c0_11 = arith.constant 0 : index
    %c0_12 = arith.constant 0 : index
    %c0_13 = arith.constant 0 : index
    %12 = vector.load %arg4[%c0_10, %c0_11, %c0_12, %c0_13] : memref<1x4x8x8xbf16, #tpu.memory_space<vmem>>, vector<1x4x8x8xbf16>
    %13 = vector.shape_cast %12 : vector<1x4x8x8xbf16> to vector<4x8x8xbf16>
    "tpu.trace_start"() <{level = 10 : i32, message = "hqd,hkd->hqk"}> : () -> ()
    %cst_14 = arith.constant dense<0.000000e+00> : vector<4x8x8xf32>
    %14 = tpu.matmul %9, %11, %cst_14 {dimension_numbers = #tpu.dot_dimension_numbers<[2], [2], [1], [1], [0, 0, 0, 1, 1, 1], [0], [0]>} : vector<4x8x8xbf16>, vector<4x8x8xbf16>, vector<4x8x8xf32> -> vector<4x8x8xf32>
    "tpu.trace_stop"() : () -> ()
    %c0_15 = arith.constant 0 : index
    %c0_16 = arith.constant 0 : index
    %c0_17 = arith.constant 0 : index
    %15 = vector.load %arg5[%c0_15, %c0_16, %c0_17] : memref<1x8x8xi8, #tpu.memory_space<vmem>>, vector<1x8x8xi8>
    %16 = vector.shape_cast %15 : vector<1x8x8xi8> to vector<8x8xi8>
    %c0_i8 = arith.constant 0 : i8
    %17 = vector.broadcast %c0_i8 : i8 to vector<8x8xi8>
    %18 = arith.cmpi ne, %16, %17 : vector<8x8xi8>
    %19 = vector.shape_cast %18 : vector<8x8xi1> to vector<1x8x8xi1>
    %cst_18 = arith.constant -1.000000e+09 : f32
    %20 = vector.shape_cast %19 : vector<1x8x8xi1> to vector<1x8x8xi1>
    %21 = vector.broadcast %20 : vector<1x8x8xi1> to vector<4x8x8xi1>
    %22 = vector.broadcast %cst_18 : f32 to vector<4x8x8xf32>
    %23 = arith.select %21, %22, %14 : vector<4x8x8xi1>, vector<4x8x8xf32>
    %cst_19 = arith.constant dense<0xFF800000> : vector<4x8xf32>
    %24 = vector.multi_reduction <maximumf>, %23, %cst_19 [2] : vector<4x8x8xf32> to vector<4x8xf32>
    %25 = vector.shape_cast %24 : vector<4x8xf32> to vector<4x8x1xf32>
    %26 = vector.broadcast %25 : vector<4x8x1xf32> to vector<4x8x8xf32>
    %27 = arith.subf %23, %26 : vector<4x8x8xf32>
    %28 = math.exp %27 : vector<4x8x8xf32>
    %cst_20 = arith.constant dense<0.000000e+00> : vector<4x8xf32>
    %29 = vector.multi_reduction <add>, %28, %cst_20 [2] : vector<4x8x8xf32> to vector<4x8xf32>
    %30 = vector.shape_cast %29 : vector<4x8xf32> to vector<4x8x1xf32>
    %31 = tpu.reciprocal %30 {approx = true} : vector<4x8x1xf32> -> vector<4x8x1xf32>
    %32 = vector.broadcast %31 : vector<4x8x1xf32> to vector<4x8x8xf32>
    %33 = arith.mulf %28, %32 : vector<4x8x8xf32>
    %34 = arith.truncf %33 : vector<4x8x8xf32> to vector<4x8x8xbf16>
    %c0_21 = arith.constant 0 : index
    %c0_22 = arith.constant 0 : index
    %c0_23 = arith.constant 0 : index
    %c0_24 = arith.constant 0 : index
    %35 = vector.load %arg11[%c0_21, %c0_22, %c0_23, %c0_24] : memref<1x4x8x8xbf16, #tpu.memory_space<vmem>>, vector<1x4x8x8xbf16>
    %36 = vector.shape_cast %35 : vector<1x4x8x8xbf16> to vector<4x8x8xbf16>
    %37 = vector.shape_cast %34 : vector<4x8x8xbf16> to vector<1x4x8x8xbf16>
    tpu.vector_store %arg11[%c0_21, %c0_22, %c0_23, %c0_24], %37 {strides = array<i32>} : memref<1x4x8x8xbf16, #tpu.memory_space<vmem>>, vector<1x4x8x8xbf16>,
    %38 = arith.truncf %33 : vector<4x8x8xf32> to vector<4x8x8xbf16>
    "tpu.trace_start"() <{level = 10 : i32, message = "hqk,hkd->hqd"}> : () -> ()
    %cst_25 = arith.constant dense<0.000000e+00> : vector<4x8x8xf32>
    %39 = tpu.matmul %38, %13, %cst_25 {dimension_numbers = #tpu.dot_dimension_numbers<[2], [1], [1], [2], [0, 0, 0, 1, 1, 2], [0], [0]>} : vector<4x8x8xbf16>, vector<4x8x8xbf16>, vector<4x8x8xf32> -> vector<4x8x8xf32>
    "tpu.trace_stop"() : () -> ()
    %40 = tpu.transpose %39, [1, 0, 2] : vector<4x8x8xf32> -> vector<8x4x8xf32>
    %41 = vector.shape_cast %40 : vector<8x4x8xf32> to vector<8x32xf32>
    %42 = arith.truncf %41 : vector<8x32xf32> to vector<8x32xbf16>
    %c0_26 = arith.constant 0 : index
    %c0_27 = arith.constant 0 : index
    %43 = vector.load %arg8[%c0_26, %c0_27] : memref<32x32xbf16, #tpu.memory_space<vmem>>, vector<32x32xbf16>
    %cst_28 = arith.constant dense<0.000000e+00> : vector<8x32xf32>
    %44 = tpu.matmul %42, %43, %cst_28 {dimension_numbers = #tpu.dot_dimension_numbers<[1], [0], [0], [1], [0, 0, 1, 1], [], []>} : vector<8x32xbf16>, vector<32x32xbf16>, vector<8x32xf32> -> vector<8x32xf32>
    %c0_29 = arith.constant 0 : index
    %c0_30 = arith.constant 0 : index
    %45 = vector.load %arg9[%c0_29, %c0_30] : memref<1x32xf32, #tpu.memory_space<vmem>>, vector<1x32xf32>
    %46 = vector.broadcast %45 : vector<1x32xf32> to vector<8x32xf32>
    %47 = arith.addf %44, %46 : vector<8x32xf32>
    %c0_31 = arith.constant 0 : index
    %c0_32 = arith.constant 0 : index
    %c0_33 = arith.constant 0 : index
    %48 = vector.load %arg10[%c0_31, %c0_32, %c0_33] : memref<1x8x32xf32, #tpu.memory_space<vmem>>, vector<1x8x32xf32>
    %49 = vector.shape_cast %48 : vector<1x8x32xf32> to vector<8x32xf32>
    %50 = vector.shape_cast %47 : vector<8x32xf32> to vector<1x8x32xf32>
    tpu.vector_store %arg10[%c0_31, %c0_32, %c0_33], %50 {strides = array<i32>} : memref<1x8x32xf32, #tpu.memory_space<vmem>>, vector<1x8x32xf32>,
    return
  }
  func.func @transform_0(%arg0: i32, %arg1: i32) -> (i32, i32, i32) {
    %c0_i32 = arith.constant 0 : i32
    %c0_i32_0 = arith.constant 0 : i32
    return %arg0, %arg1, %c0_i32 : i32, i32, i32
  }
  func.func @transform_1(%arg0: i32, %arg1: i32) -> (i32, i32, i32, i32) {
    %c0_i32 = arith.constant 0 : i32
    %c0_i32_0 = arith.constant 0 : i32
    %c0_i32_1 = arith.constant 0 : i32
    %c0_i32_2 = arith.constant 0 : i32
    return %arg0, %c0_i32, %c0_i32_0, %c0_i32_1 : i32, i32, i32, i32
  }
  func.func @transform_2(%arg0: i32, %arg1: i32) -> (i32, i32, i32, i32) {
    %c0_i32 = arith.constant 0 : i32
    %c0_i32_0 = arith.constant 0 : i32
    %c0_i32_1 = arith.constant 0 : i32
    %c0_i32_2 = arith.constant 0 : i32
    return %arg0, %c0_i32, %c0_i32_0, %c0_i32_1 : i32, i32, i32, i32
  }
  func.func @transform_3(%arg0: i32, %arg1: i32) -> (i32, i32, i32) {
    %c0_i32 = arith.constant 0 : i32
    %c0_i32_0 = arith.constant 0 : i32
    return %arg0, %arg1, %c0_i32 : i32, i32, i32
  }
  func.func @transform_4(%arg0: i32, %arg1: i32) -> (i32, i32) {
    %c0_i32 = arith.constant 0 : i32
    %c0_i32_0 = arith.constant 0 : i32
    %c0_i32_1 = arith.constant 0 : i32
    return %c0_i32, %c0_i32_0 : i32, i32
  }
  func.func @transform_5(%arg0: i32, %arg1: i32) -> (i32, i32) {
    %c0_i32 = arith.constant 0 : i32
    %c0_i32_0 = arith.constant 0 : i32
    %c0_i32_1 = arith.constant 0 : i32
    return %c0_i32, %c0_i32_0 : i32, i32
  }
  func.func @transform_6(%arg0: i32, %arg1: i32) -> (i32, i32) {
    %c0_i32 = arith.constant 0 : i32
    %c0_i32_0 = arith.constant 0 : i32
    %c0_i32_1 = arith.constant 0 : i32
    return %c0_i32, %c0_i32_0 : i32, i32
  }
  func.func @transform_7(%arg0: i32, %arg1: i32) -> (i32, i32) {
    %c0_i32 = arith.constant 0 : i32
    %c0_i32_0 = arith.constant 0 : i32
    %c0_i32_1 = arith.constant 0 : i32
    return %c0_i32, %c0_i32_0 : i32, i32
  }
  func.func @transform_8(%arg0: i32, %arg1: i32) -> (i32, i32, i32) {
    %c0_i32 = arith.constant 0 : i32
    %c0_i32_0 = arith.constant 0 : i32
    return %arg0, %arg1, %c0_i32 : i32, i32, i32
  }
  func.func @transform_9(%arg0: i32, %arg1: i32) -> (i32, i32, i32, i32) {
    %c0_i32 = arith.constant 0 : i32
    %c0_i32_0 = arith.constant 0 : i32
    %c0_i32_1 = arith.constant 0 : i32
    return %arg0, %c0_i32, %arg1, %c0_i32_0 : i32, i32, i32, i32
  }
}

module attributes {stable_mosaic.version = 11 : i64} {
  func.func @mha_kernel(%arg0: i32, %arg1: i32, %arg2: memref<1x8x32xbf16, #tpu.memory_space<vmem>>, %arg3: memref<1x4x8x8xbf16, #tpu.memory_space<vmem>>, %arg4: memref<1x4x8x8xbf16, #tpu.memory_space<vmem>>, %arg5: memref<1x8x8xi8, #tpu.memory_space<vmem>>, %arg6: memref<32x32xbf16, #tpu.memory_space<vmem>>, %arg7: memref<1x32xf32, #tpu.memory_space<vmem>>, %arg8: memref<32x32xbf16, #tpu.memory_space<vmem>>, %arg9: memref<1x32xf32, #tpu.memory_space<vmem>>, %arg10: memref<1x8x32xf32, #tpu.memory_space<vmem>>, %arg11: memref<1x4x8x8xbf16, #tpu.memory_space<vmem>>) attributes {dimension_semantics = [#tpu.dimension_semantics<parallel>, #tpu.dimension_semantics<parallel>], iteration_bounds = array<i64: 2, 1>, scalar_prefetch = 0 : i64, scratch_operands = 0 : i64, tpu.core_type = #tpu.core_type<tc>, window_params = [{transform_indices = @transform_0, window_bounds = array<i64: 1, 8, 32>}, {transform_indices = @transform_1, window_bounds = array<i64: 1, 4, 8, 8>}, {transform_indices = @transform_2, window_bounds = array<i64: 1, 4, 8, 8>}, {transform_indices = @transform_3, window_bounds = array<i64: 1, 8, 8>}, {pipeline_mode = #tpu.pipeline_mode<synchronous>, transform_indices = @transform_4, window_bounds = array<i64: 32, 32>}, {pipeline_mode = #tpu.pipeline_mode<synchronous>, transform_indices = @transform_5, window_bounds = array<i64: 1, 32>}, {pipeline_mode = #tpu.pipeline_mode<synchronous>, transform_indices = @transform_6, window_bounds = array<i64: 32, 32>}, {pipeline_mode = #tpu.pipeline_mode<synchronous>, transform_indices = @transform_7, window_bounds = array<i64: 1, 32>}, {transform_indices = @transform_8, window_bounds = array<i64: 1, 8, 32>}, {transform_indices = @transform_9, window_bounds = array<i64: 1, 4, 8, 8>}]} {
    %c0 = arith.constant 0 : index
    %c0_0 = arith.constant 0 : index
    %c0_1 = arith.constant 0 : index
    %0 = vector.load %arg2[%c0, %c0_0, %c0_1] : memref<1x8x32xbf16, #tpu.memory_space<vmem>>, vector<1x8x32xbf16>
    %1 = vector.shape_cast %0 : vector<1x8x32xbf16> to vector<8x32xbf16>
    %c0_2 = arith.constant 0 : index
    %c0_3 = arith.constant 0 : index
    %2 = vector.load %arg6[%c0_2, %c0_3] : memref<32x32xbf16, #tpu.memory_space<vmem>>, vector<32x32xbf16>
    %cst = arith.constant dense<0.000000e+00> : vector<8x32xf32>
    %3 = tpu.matmul %1, %2, %cst {dimension_numbers = #tpu.dot_dimension_numbers<[1], [0], [0], [1], [0, 0, 1, 1], [], []>} : vector<8x32xbf16>, vector<32x32xbf16>, vector<8x32xf32> -> vector<8x32xf32>
    %c0_4 = arith.constant 0 : index
    %c0_5 = arith.constant 0 : index
    %4 = vector.load %arg7[%c0_4, %c0_5] : memref<1x32xf32, #tpu.memory_space<vmem>>, vector<1x32xf32>
    %5 = vector.broadcast %4 : vector<1x32xf32> to vector<8x32xf32>
    %6 = arith.addf %3, %5 : vector<8x32xf32>
    %7 = arith.truncf %6 : vector<8x32xf32> to vector<8x32xbf16>
    %8 = vector.shape_cast %7 : vector<8x32xbf16> to vector<8x4x8xbf16>
    %9 = tpu.transpose %8, [1, 0, 2] : vector<8x4x8xbf16> -> vector<4x8x8xbf16>
    %c0_6 = arith.constant 0 : index
    %c0_7 = arith.constant 0 : index
    %c0_8 = arith.constant 0 : index
    %c0_9 = arith.constant 0 : index
    %10 = vector.load %arg3[%c0_6, %c0_7, %c0_8, %c0_9] : memref<1x4x8x8xbf16, #tpu.memory_space<vmem>>, vector<1x4x8x8xbf16>
    %11 = vector.shape_cast %10 : vector<1x4x8x8xbf16> to vector<4x8x8xbf16>
    %c0_10 = arith.constant 0 : index
    %c0_11 = arith.constant 0 : index
    %c0_12 = arith.constant 0 : index
    %c0_13 = arith.constant 0 : index
    %12 = vector.load %arg4[%c0_10, %c0_11, %c0_12, %c0_13] : memref<1x4x8x8xbf16, #tpu.memory_space<vmem>>, vector<1x4x8x8xbf16>
    %13 = vector.shape_cast %12 : vector<1x4x8x8xbf16> to vector<4x8x8xbf16>
    "tpu.trace_start"() <{level = 10 : i32, message = "hqd,hkd->hqk"}> : () -> ()
    %cst_14 = arith.constant dense<0.000000e+00> : vector<4x8x8xf32>
    %14 = tpu.matmul %9, %11, %cst_14 {dimension_numbers = #tpu.dot_dimension_numbers<[2], [2], [1], [1], [0, 0, 0, 1, 1, 1], [0], [0]>} : vector<4x8x8xbf16>, vector<4x8x8xbf16>, vector<4x8x8xf32> -> vector<4x8x8xf32>
    "tpu.trace_stop"() : () -> ()
    %c0_15 = arith.constant 0 : index
    %c0_16 = arith.constant 0 : index
    %c0_17 = arith.constant 0 : index
    %15 = vector.load %arg5[%c0_15, %c0_16, %c0_17] : memref<1x8x8xi8, #tpu.memory_space<vmem>>, vector<1x8x8xi8>
    %16 = vector.shape_cast %15 : vector<1x8x8xi8> to vector<8x8xi8>
    %c0_i8 = arith.constant 0 : i8
    %17 = vector.broadcast %c0_i8 : i8 to vector<8x8xi8>
    %18 = arith.cmpi ne, %16, %17 : vector<8x8xi8>
    %19 = vector.shape_cast %18 : vector<8x8xi1> to vector<1x8x8xi1>
    %cst_18 = arith.constant -1.000000e+09 : f32
    %20 = vector.shape_cast %19 : vector<1x8x8xi1> to vector<1x8x8xi1>
    %21 = vector.broadcast %20 : vector<1x8x8xi1> to vector<4x8x8xi1>
    %22 = vector.broadcast %cst_18 : f32 to vector<4x8x8xf32>
    %23 = arith.select %21, %22, %14 : vector<4x8x8xi1>, vector<4x8x8xf32>
    %cst_19 = arith.constant dense<0xFF800000> : vector<4x8xf32>
    %24 = vector.multi_reduction <maximumf>, %23, %cst_19 [2] : vector<4x8x8xf32> to vector<4x8xf32>
    %25 = vector.shape_cast %24 : vector<4x8xf32> to vector<4x8x1xf32>
    %26 = vector.broadcast %25 : vector<4x8x1xf32> to vector<4x8x8xf32>
    %27 = arith.subf %23, %26 : vector<4x8x8xf32>
    %28 = math.exp %27 : vector<4x8x8xf32>
    %cst_20 = arith.constant dense<0.000000e+00> : vector<4x8xf32>
    %29 = vector.multi_reduction <add>, %28, %cst_20 [2] : vector<4x8x8xf32> to vector<4x8xf32>
    %30 = vector.shape_cast %29 : vector<4x8xf32> to vector<4x8x1xf32>
    %31 = tpu.reciprocal %30 {approx = true} : vector<4x8x1xf32> -> vector<4x8x1xf32>
    %32 = vector.broadcast %31 : vector<4x8x1xf32> to vector<4x8x8xf32>
    %33 = arith.mulf %28, %32 : vector<4x8x8xf32>
    %34 = arith.truncf %33 : vector<4x8x8xf32> to vector<4x8x8xbf16>
    %c0_21 = arith.constant 0 : index
    %c0_22 = arith.constant 0 : index
    %c0_23 = arith.constant 0 : index
    %c0_24 = arith.constant 0 : index
    %35 = vector.load %arg11[%c0_21, %c0_22, %c0_23, %c0_24] : memref<1x4x8x8xbf16, #tpu.memory_space<vmem>>, vector<1x4x8x8xbf16>
    %36 = vector.shape_cast %35 : vector<1x4x8x8xbf16> to vector<4x8x8xbf16>
    %37 = vector.shape_cast %34 : vector<4x8x8xbf16> to vector<1x4x8x8xbf16>
    tpu.vector_store %arg11[%c0_21, %c0_22, %c0_23, %c0_24], %37 {strides = array<i32>} : memref<1x4x8x8xbf16, #tpu.memory_space<vmem>>, vector<1x4x8x8xbf16>,
    %38 = arith.truncf %33 : vector<4x8x8xf32> to vector<4x8x8xbf16>
    "tpu.trace_start"() <{level = 10 : i32, message = "hqk,hkd->hqd"}> : () -> ()
    %cst_25 = arith.constant dense<0.000000e+00> : vector<4x8x8xf32>
    %39 = tpu.matmul %38, %13, %cst_25 {dimension_numbers = #tpu.dot_dimension_numbers<[2], [1], [1], [2], [0, 0, 0, 1, 1, 2], [0], [0]>} : vector<4x8x8xbf16>, vector<4x8x8xbf16>, vector<4x8x8xf32> -> vector<4x8x8xf32>
    "tpu.trace_stop"() : () -> ()
    %40 = tpu.transpose %39, [1, 0, 2] : vector<4x8x8xf32> -> vector<8x4x8xf32>
    %41 = vector.shape_cast %40 : vector<8x4x8xf32> to vector<8x32xf32>
    %42 = arith.truncf %41 : vector<8x32xf32> to vector<8x32xbf16>
    %c0_26 = arith.constant 0 : index
    %c0_27 = arith.constant 0 : index
    %43 = vector.load %arg8[%c0_26, %c0_27] : memref<32x32xbf16, #tpu.memory_space<vmem>>, vector<32x32xbf16>
    %cst_28 = arith.constant dense<0.000000e+00> : vector<8x32xf32>
    %44 = tpu.matmul %42, %43, %cst_28 {dimension_numbers = #tpu.dot_dimension_numbers<[1], [0], [0], [1], [0, 0, 1, 1], [], []>} : vector<8x32xbf16>, vector<32x32xbf16>, vector<8x32xf32> -> vector<8x32xf32>
    %c0_29 = arith.constant 0 : index
    %c0_30 = arith.constant 0 : index
    %45 = vector.load %arg9[%c0_29, %c0_30] : memref<1x32xf32, #tpu.memory_space<vmem>>, vector<1x32xf32>
    %46 = vector.broadcast %45 : vector<1x32xf32> to vector<8x32xf32>
    %47 = arith.addf %44, %46 : vector<8x32xf32>
    %c0_31 = arith.constant 0 : index
    %c0_32 = arith.constant 0 : index
    %c0_33 = arith.constant 0 : index
    %48 = vector.load %arg10[%c0_31, %c0_32, %c0_33] : memref<1x8x32xf32, #tpu.memory_space<vmem>>, vector<1x8x32xf32>
    %49 = vector.shape_cast %48 : vector<1x8x32xf32> to vector<8x32xf32>
    %50 = vector.shape_cast %47 : vector<8x32xf32> to vector<1x8x32xf32>
    tpu.vector_store %arg10[%c0_31, %c0_32, %c0_33], %50 {strides = array<i32>} : memref<1x8x32xf32, #tpu.memory_space<vmem>>, vector<1x8x32xf32>,
    return
  }
  func.func @transform_0(%arg0: i32, %arg1: i32) -> (i32, i32, i32) {
    %c0_i32 = arith.constant 0 : i32
    %c0_i32_0 = arith.constant 0 : i32
    return %arg0, %arg1, %c0_i32 : i32, i32, i32
  }
  func.func @transform_1(%arg0: i32, %arg1: i32) -> (i32, i32, i32, i32) {
    %c0_i32 = arith.constant 0 : i32
    %c0_i32_0 = arith.constant 0 : i32
    %c0_i32_1 = arith.constant 0 : i32
    %c0_i32_2 = arith.constant 0 : i32
    return %arg0, %c0_i32, %c0_i32_0, %c0_i32_1 : i32, i32, i32, i32
  }
  func.func @transform_2(%arg0: i32, %arg1: i32) -> (i32, i32, i32, i32) {
    %c0_i32 = arith.constant 0 : i32
    %c0_i32_0 = arith.constant 0 : i32
    %c0_i32_1 = arith.constant 0 : i32
    %c0_i32_2 = arith.constant 0 : i32
    return %arg0, %c0_i32, %c0_i32_0, %c0_i32_1 : i32, i32, i32, i32
  }
  func.func @transform_3(%arg0: i32, %arg1: i32) -> (i32, i32, i32) {
    %c0_i32 = arith.constant 0 : i32
    %c0_i32_0 = arith.constant 0 : i32
    return %arg0, %arg1, %c0_i32 : i32, i32, i32
  }
  func.func @transform_4(%arg0: i32, %arg1: i32) -> (i32, i32) {
    %c0_i32 = arith.constant 0 : i32
    %c0_i32_0 = arith.constant 0 : i32
    %c0_i32_1 = arith.constant 0 : i32
    return %c0_i32, %c0_i32_0 : i32, i32
  }
  func.func @transform_5(%arg0: i32, %arg1: i32) -> (i32, i32) {
    %c0_i32 = arith.constant 0 : i32
    %c0_i32_0 = arith.constant 0 : i32
    %c0_i32_1 = arith.constant 0 : i32
    return %c0_i32, %c0_i32_0 : i32, i32
  }
  func.func @transform_6(%arg0: i32, %arg1: i32) -> (i32, i32) {
    %c0_i32 = arith.constant 0 : i32
    %c0_i32_0 = arith.constant 0 : i32
    %c0_i32_1 = arith.constant 0 : i32
    return %c0_i32, %c0_i32_0 : i32, i32
  }
  func.func @transform_7(%arg0: i32, %arg1: i32) -> (i32, i32) {
    %c0_i32 = arith.constant 0 : i32
    %c0_i32_0 = arith.constant 0 : i32
    %c0_i32_1 = arith.constant 0 : i32
    return %c0_i32, %c0_i32_0 : i32, i32
  }
  func.func @transform_8(%arg0: i32, %arg1: i32) -> (i32, i32, i32) {
    %c0_i32 = arith.constant 0 : i32
    %c0_i32_0 = arith.constant 0 : i32
    return %arg0, %arg1, %c0_i32 : i32, i32, i32
  }
  func.func @transform_9(%arg0: i32, %arg1: i32) -> (i32, i32, i32, i32) {
    %c0_i32 = arith.constant 0 : i32
    %c0_i32_0 = arith.constant 0 : i32
    %c0_i32_1 = arith.constant 0 : i32
    return %arg0, %c0_i32, %arg1, %c0_i32_0 : i32, i32, i32, i32
  }
}

</mosaic_0001>

<bundles_post_ra>
// kernel: tpu_custom_call.1
= control target key start
LH: loop header
LB: loop body
LE: loop exit
PB: predicated region body
PF: predicated region fallthrough
CT: control target
= control target key end

     0   :  { %s2611_s0 = inlined_call_operand.hbm [shape: bf16[2,8,32], index: 0, kind: input, shape index: {}]   ;;  %s2612_s1 = inlined_call_operand.hbm [shape: bf16[2,4,8,8], index: 1, kind: input, shape index: {}]   ;;  %s2613_s2 = inlined_call_operand.hbm [shape: bf16[2,4,8,8], index: 2, kind: input, shape index: {}]   ;;  %s2614_s3 = inlined_call_operand.vmem [shape: s8[2,8,8], index: 3, kind: input, shape index: {}]   ;;  %s2615_s4 = inlined_call_operand.hbm [shape: bf16[32,32], index: 4, kind: input, shape index: {}]   ;;  %s2616_s5 = inlined_call_operand.vmem [shape: f32[1,32], index: 5, kind: input, shape index: {}]   ;;  %s2617_s6 = inlined_call_operand.vmem [shape: bf16[32,32], index: 6, kind: input, shape index: {}]   ;;  %s2618_s7 = inlined_call_operand.vmem [shape: f32[1,32], index: 7, kind: input, shape index: {}]   ;;  %s2619_s8 = inlined_call_operand.hbm [shape: f32[2,8,32], index: 8, kind: output, shape index: {0}]   ;;  %s2620_s9 = inlined_call_operand.hbm [shape: bf16[2,4,8,8], index: 9, kind: output, shape index: {1}]  }
   0x1   :  { %2633 = sst [smem:[#allocation20_spill]] %s2611_s0 }
   0x2   :  { %2634 = sst [smem:[#allocation21_spill]] %s2612_s1 }
   0x3   :  { %2635 = sst [smem:[#allocation22_spill]] %s2618_s7 }
   0x4   :  { %2636 = sst [smem:[#allocation23_spill]] %s2619_s8 }
   0x5   :  { %2637 = sst [smem:[#allocation24_spill]] %s2620_s9 }
   0x6   :  { %15 = vsyncpa [#allocation3], 0 }
   0x7   :  { %17 = vsyncpa [#allocation3 + $0x1], 0 }
   0x8   :  { %18 = vsyncpa [#allocation6], 0 }
   0x9   :  { %19 = vsyncpa [#allocation9], 0 }
   0xa   :  { %20 = vsyncpa [#allocation4], 0 }
   0xb   :  { %22 = vsyncpa [#allocation4 + $0x1], 0 }
   0xc   :  { %23 = vsyncpa [#allocation12], 0 }
   0xd   :  { %25 = vsyncpa [#allocation12 + $0x1], 0  ;;  %s2137_s30 = smov 0   ;;  %s2139_s10 = smov 0  }
   0xe   :  { %s2141_s11 = smov 0   ;;  %s2143_s12 = smov 0  }
   0xf   :  { %s2145_s13 = smov 0   ;;  %s2147_s14 = smov 0  }
  0x10 LB: > { %2638 = sst [smem:[#allocation18_spill]] %s2044_s30  ;;  %s2621_s15 = sadd.s32 4294967295, %s2064_s14   ;;  %s2064_s14 = sphi %s2147_s14, %s31_s14   ;;  %s2060_s13 = sphi %s2145_s13, %s2671_s13   ;;  %s2056_s12 = sphi %s2143_s12, %s2670_s12   ;;  %s2052_s11 = sphi %s2141_s11, %s2669_s11   ;;  %s2048_s10 = sphi %s2139_s10, %s2668_s10   ;;  %s2044_s30 = sphi %s2137_s30, %s2667_s30  }
  0x11   : > { %s1569_s16 = sadd.s32 4294967294, %s2064_s14   ;;  %p65_p0 = scmp.ne.s32.totalorder %s2048_s10, %s2044_s30 }
  0x12   : > { %p2173_p1 = scmp.eq.s32.totalorder %s2621_s15, 0  ;;  %p261_p2 = scmp.eq.s32.totalorder %s1569_s16, 1 }
  0x13   : > { %p1570_p3 = scmp.ge.s32.totalorder %s2064_s14, 1  ;;  %p296_p5 = scmp.lt.s32.totalorder %s2064_s14, 3 }
  0x14   : > { %s2639_s17 = scalar_select %p2173_p1, 1, 0 }
  0x15   : > { %p2180_p4 = por %p2173_p1, %p65_p0  ;;  %p2185_p6 = por %p261_p2, %p65_p0 }
  0x16   : > { %s2190_s20 = sshll.u32 %s2056_s12, 8  ;;  %p2192_p7 = pnand %p1570_p3, %p296_p5 }
  0x17   : > { %s2640_s18 = scalar_select %p2180_p4, 1, 0 }
  0x18   : > { %s2641_s19 = scalar_select %p2185_p6, 1, 0 }
  0x19   : > { %s2643_s21 = scalar_select %p2192_p7, 1, 0 }
  0x1a   : > { %2642 = sst [smem:[#allocation19_spill]] %s2641_s19  ;;  %s2644_s1 = sld [smem:[#allocation21_spill]] }
  0x1b   : > { %p2624_p8 = pneg %p2192_p7  ;;  %s2066_s25 = smov [#allocation5]  }
  0x1c   : > { %s311_s26 = sshll.u32 %s2066_s25, 4  ;;  %s2219_s16 = scalar_lea.hbm %s2613_s2, %s2190_s20  ;;  %s2204_s26 = int_to_ptr.vmem [resolvable:$true] %s311_s26 }
  0x1d   : > { %p2211_p9 = pnand %p2624_p8, %p2180_p4 }
  0x1f   : > { %p1826_p12 = pneg %p2211_p9 }
  0x20   : > { %s2200_s24 = scalar_lea.hbm %s2644_s1, %s2190_s20  ;;  %s1829_s15 = scalar_lea.hbm %s2644_s1, 512 }
  0x21   : > { %s1824_s22 = scalar_lea.hbm %s2200_s24, 256  ;;  %p1830_p2 = scmp.lt.u32.totalorder %s2200_s24, %s2644_s1 }
  0x22   : > { %p1825_p11 = scmp.ne.s32.totalorder %s2200_s24, %s1824_s22  ;;  %p1831_p3 = scmp.lt.u32.totalorder %s1829_s15, %s1824_s22 }
  0x23   : > { %p1833_p8 = scmp.lt.u32.totalorder %s1824_s22, %s2200_s24 }
  0x24   : > { %p1827_p13 = pnand %p1826_p12, %p1825_p11  ;;  %p1832_p5 = por %p1831_p3, %p1830_p2 }
  0x26   : > { %p1828_p0 = pneg %p1827_p13  ;;  %p1834_p10 = por %p1833_p8, %p1832_p5 }
  0x28   : > { %p1835_p6 = pnand %p1834_p10, %p1828_p0 }
  0x2a   : > { %1838 = shalt.err (!%p1835_p6)
}
  0x2b   : > { %s1839_s28 = scalar_lea.vmem %s2204_s26, 256  ;;  %p1847_p7 = scmp.lt.s32.totalorder %s2204_s26, %s2204_s26 }
  0x2c   : > { %p1840_p11 = scmp.ne.s32.totalorder %s2204_s26, %s1839_s28  ;;  %p1848_p1 = scmp.lt.s32.totalorder %s1839_s28, %s1839_s28 }
  0x2e   : > { %p1842_p13 = pnand %p1840_p11, %p1826_p12  ;;  %p1849_p2 = por %p1848_p1, %p1847_p7 }
  0x30   : > { %p1843_p4 = pneg %p1842_p13 }
  0x32   : > { %p1850_p3 = pnand %p1849_p2, %p1843_p4 }
  0x34   : > { %1853 = shalt.err (!%p1850_p3)
}
  0x35   : > { %s2067_s30 = smov 64   ;;  %s2068_s15 = smov 4  }
  0x36   : > { %1716 = dma.hbm_to_vmem [thread:$0]  (!%p2211_p9), %s2200_s24, 256, %s2204_s26, [#allocation6], %s2067_s30, %s2067_s30, %s2068_s15  }
  0x37   : > { %s2069_s19 = smov [#allocation7]   ;;  %s2070_s22 = smov [#allocation8]  }
  0x38   : > { %s327_s29 = sshll.u32 %s2069_s19, 4  ;;  %s340_s23 = sshll.u32 %s2070_s22, 4  ;;  %s328_s29 = int_to_ptr.vmem [resolvable:$true] %s327_s29  ;;  %s341_s23 = int_to_ptr.vmem [resolvable:$true] %s340_s23 }
  0x39   : > { %s1854_s25 = scalar_lea.hbm %s2219_s16, 256  ;;  %s1859_s8 = scalar_lea.hbm %s2613_s2, 512 }
  0x3a   : > { %p1855_p1 = scmp.ne.s32.totalorder %s2219_s16, %s1854_s25  ;;  %p1860_p7 = scmp.lt.u32.totalorder %s2219_s16, %s2613_s2 }
  0x3b   : > { %p1861_p8 = scmp.lt.u32.totalorder %s1859_s8, %s1854_s25  ;;  %p1863_p0 = scmp.lt.u32.totalorder %s1854_s25, %s2219_s16 }
  0x3c   : > { %p1857_p4 = pnand %p1855_p1, %p1826_p12 }
  0x3d   : > { %p1862_p10 = por %p1861_p8, %p1860_p7 }
  0x3e   : > { %p1858_p6 = pneg %p1857_p4 }
  0x3f   : > { %p1864_p5 = por %p1863_p0, %p1862_p10 }
  0x41   : > { %p1865_p11 = pnand %p1864_p5, %p1858_p6 }
  0x43   : > { %1868 = shalt.err (!%p1865_p11)
}
  0x44   : > { %s1869_s24 = scalar_lea.vmem %s328_s29, 256  ;;  %p1877_p1 = scmp.lt.s32.totalorder %s328_s29, %s328_s29 }
  0x45   : > { %p1870_p13 = scmp.ne.s32.totalorder %s328_s29, %s1869_s24  ;;  %p1878_p4 = scmp.lt.s32.totalorder %s1869_s24, %s1869_s24 }
  0x47   : > { %p1872_p2 = pnand %p1870_p13, %p1826_p12  ;;  %p1879_p7 = por %p1878_p4, %p1877_p1 }
  0x49   : > { %p1873_p3 = pneg %p1872_p2 }
  0x4b   : > { %p1880_p8 = pnand %p1879_p7, %p1873_p3 }
  0x4d   : > { %1883 = shalt.err (!%p1880_p8)
}
  0x4e   : > { %1719 = dma.hbm_to_vmem [thread:$0]  (!%p2211_p9), %s2219_s16, 256, %s328_s29, [#allocation6], %s2067_s30, %s2067_s30, %s2068_s15  }
  0x4f   : > { %p2646_p6 = scmp.ne.s32.totalorder %s2639_s17, 0  ;;  %p2647_p10 = scmp.ne.s32.totalorder %s2643_s21, 0 }
  0x50   : > { %s1884_s9 = scalar_lea.hbm %s2615_s4, 256 }
  0x51   : > { %p2648_p0 = pneg %p2647_p10  ;;  %p1885_p5 = scmp.ne.s32.totalorder %s2615_s4, %s1884_s9 }
  0x52   : > { %p1891_p2 = scmp.lt.u32.totalorder %s1884_s9, %s2615_s4 }
  0x53   : > { %p2278_p12 = pnand %p2648_p0, %p2646_p6 }
  0x55   : > { %p1886_p11 = pneg %p2278_p12 }
  0x57   : > { %p1887_p9 = pnand %p1886_p11, %p1885_p5 }
  0x59   : > { %p1888_p13 = pneg %p1887_p9 }
  0x5b   : > { %p1893_p3 = pnand %p1891_p2, %p1888_p13 }
  0x5d   : > { %1896 = shalt.err (!%p1893_p3)
}
  0x5e   : > { %s1897_s29 = scalar_lea.vmem %s341_s23, 256  ;;  %p1905_p8 = scmp.lt.s32.totalorder %s341_s23, %s341_s23 }
  0x5f   : > { %p1898_p1 = scmp.ne.s32.totalorder %s341_s23, %s1897_s29  ;;  %p1906_p6 = scmp.lt.s32.totalorder %s1897_s29, %s1897_s29 }
  0x61   : > { %p1900_p4 = pnand %p1898_p1, %p1886_p11  ;;  %p1907_p0 = por %p1906_p6, %p1905_p8 }
  0x63   : > { %p1901_p7 = pneg %p1900_p4 }
  0x65   : > { %p1908_p10 = pnand %p1907_p0, %p1901_p7 }
  0x67   : > { %1911 = shalt.err (!%p1908_p10)
}
  0x68   : > { %1722 = dma.hbm_to_vmem [thread:$0]  (!%p2278_p12), %s2615_s4, 256, %s341_s23, [#allocation9], %s2067_s30, %s2067_s30, %s2068_s15  }
  0x69   : > { %s43_s28 = sadd.s32 1, %s2060_s13  ;;  %s52_s24 = sadd.s32 1, %s2052_s11 }
  0x6a   : > { %p45_p10 = scmp.ge.s32.totalorder %s43_s28, 2  ;;  %p59_p5 = scmp.ne.s32.totalorder %s2052_s11, %s2048_s10 }
  0x6b   : > { %p60_p11 = scmp.eq.s32.totalorder %s2064_s14, 0  ;;  %s2651_s7 = sadd.s32 4294967295, %s2064_s14  }
  0x6c   : > { %s2673_s28 = smov (%p45_p10, %s43_s28), 0  ;;  %p255_p13 = scmp.eq.s32.totalorder %s2651_s7, 1 }
  0x6d   : > { %p2308_p9 = por %p60_p11, %p59_p5  ;;  %s47_s8 = ssub.s32 %s2060_s13, %s2673_s28 }
  0x6e   : > { %p1735_p2 = scmp.lt.s32.totalorder %s2064_s14, 2  ;;  %p50_p3 = scmp.eq.s32.totalorder %s47_s8, 0 }
  0x6f   : > { %p2317_p1 = por %p255_p13, %p59_p5  ;;  %s363_s15 = sand.u32 1, %s2052_s11  }
  0x70   : > { %s1578_s23 = sshll.u32 %s2060_s13, 6  ;;  %s1577_s26 = sshll.u32 %s363_s15, 2 }
  0x71   : > { %s2324_s9 = scalar_select %p50_p3, %s2052_s11, %s52_s24  }
  0x72   : > { %s2653_s0 = sld [smem:[#allocation20_spill]]  ;;  %s367_s29 = scalar_lea.vmem [#allocation2], %s1577_s26 }
  0x73   : > { %s375_s22 = sshll.u32 %s367_s29, 4  ;;  %p2333_p12 = pnand %p1735_p2, %p2308_p9  ;;  %s2337_s22 = int_to_ptr.vmem [resolvable:$true] %s375_s22 }
  0x74   : > { %s364_s24 = scalar_lea.sflag [#allocation3], %s363_s15 }
  0x75   : > { %p1914_p7 = pneg %p2333_p12 }
  0x78   : > { %s2329_s19 = scalar_lea.hbm %s2653_s0, %s1578_s23  ;;  %s1917_s1 = scalar_lea.hbm %s2653_s0, 128 }
  0x79   : > { %s1912_s7 = scalar_lea.hbm %s2329_s19, 64  ;;  %p1918_p0 = scmp.lt.u32.totalorder %s2329_s19, %s2653_s0 }
  0x7a   : > { %p1913_p4 = scmp.ne.s32.totalorder %s2329_s19, %s1912_s7  ;;  %p1919_p10 = scmp.lt.u32.totalorder %s1917_s1, %s1912_s7 }
  0x7b   : > { %p1921_p11 = scmp.lt.u32.totalorder %s1912_s7, %s2329_s19 }
  0x7c   : > { %p1915_p8 = pnand %p1914_p7, %p1913_p4  ;;  %p1920_p5 = por %p1919_p10, %p1918_p0 }
  0x7e   : > { %p1916_p6 = pneg %p1915_p8  ;;  %p1922_p9 = por %p1921_p11, %p1920_p5 }
  0x80   : > { %p1923_p13 = pnand %p1922_p9, %p1916_p6 }
  0x82   : > { %1926 = shalt.err (!%p1923_p13)
}
  0x83   : > { %s1927_s15 = scalar_lea.vmem %s2337_s22, 64  ;;  %s2071_s16 = smov [#allocation2]  }
  0x84   : > { %p1928_p2 = scmp.ne.s32.totalorder %s2337_s22, %s1927_s15  ;;  %s1932_s29 = sshll.u32 %s2071_s16, 4  ;;  %s1933_s29 = int_to_ptr.vmem [resolvable:$false] %s1932_s29 }
  0x85   : > { %s1934_s8 = scalar_lea.vmem %s1933_s29, 128  ;;  %p1935_p8 = scmp.lt.s32.totalorder %s2337_s22, %s1933_s29 }
  0x86   : > { %p1930_p3 = pnand %p1928_p2, %p1914_p7  ;;  %p1936_p0 = scmp.lt.s32.totalorder %s1934_s8, %s1927_s15 }
  0x88   : > { %p1931_p4 = pneg %p1930_p3  ;;  %p1937_p10 = por %p1936_p0, %p1935_p8 }
  0x8a   : > { %p1938_p5 = pnand %p1937_p10, %p1931_p4 }
  0x8c   : > { %1941 = shalt.err (!%p1938_p5)
}
  0x8d   : > { %1726 = dma.hbm_to_vmem [thread:$0]  (!%p2333_p12), %s2329_s19, 64, %s2337_s22, %s364_s24  }
  0x8e   : > { %p2655_p6 = scmp.ne.s32.totalorder %s2643_s21, 0 }
  0x8f   : > { %s2367_s7 = sand.u32 (!%p2655_p6), 1, %s2048_s10   ;;  %p2656_p7 = scmp.ne.s32.totalorder (!%p2655_p6), %s2640_s18, 0 }
  0x90   : > { %394 = sbr.rel (%p2655_p6) target bundleno = 1644 (0x66c), region = 52  ;;  %s1580_s23 = sshll.u32 (!%p2655_p6), %s2367_s7, 2 }
  0x91   : > { %s397_s1 = scalar_lea.sflag (!%p2655_p6), [#allocation3], %s2367_s7  ;;  %s400_s26 = scalar_lea.vmem (!%p2655_p6), [#allocation2], %s1580_s23 }
  0x97   : > { %2023 = dma.done.wait (%p2656_p7), %s397_s1, 64  }
  0x98   : > { %2025 = vsyncadd (%p2656_p7), %s397_s1, 4294967232 }
  0x99   : > { %2027 = dma.done.wait (%p2656_p7), [#allocation6], 512  }
  0x9a   : > { %2029 = vsyncadd (%p2656_p7), [#allocation6], 4294966784  ;;  %p2657_p12 = scmp.ne.s32.totalorder %s2639_s17, 0 }
  0x9c   : > { %2031 = dma.done.wait (%p2657_p12), [#allocation9], 256  }
  0x9d   : > { %2033 = vsyncadd (%p2657_p12), [#allocation9], 4294967040  ;;  %v2072_v0 = vmov 0.0   ;;  %vm2073_vm0 = vmmov 0   ;;  %v1804_v1 = vld [vmem:[#allocation8] sm:$0xff]   ;;  %v1805_v2 = vld [vmem:[#allocation8 + $0x8] sm:$0xff]   ;;  %v548_v17 = vlaneseq }
  0x9e   : > { %1635 = vmatprep.subr.bf16.mxu0 %v2072_v0  ;;  %1639 = vmatprep.mubr.msk.bf16.mxu0 %vm2073_vm0, %v2072_v0  ;;  %v469_v3 = vld [vmem:[%s400_s26] sm:$0xf]  ;;  %vm493_vm1 = vcmask 261120   ;;  %v1585_v4 = vld [vmem:[%s2616_s5] ss:$0 sm:$0xff]  ;;  %s2074_s21 = smov 104  }
  0x9f   : > { %1643 = vmatprep.subr.bf16.mxu1 %v2072_v0  ;;  %1645 = vmatprep.mubr.msk.bf16.mxu1 %vm2073_vm0, %v2072_v0  ;;  %s2075_s19 = smov 120   ;;  %s2076_s22 = smov 112   ;;  %v706_v11 = vld [vmem:[#allocation5] sm:$0xf]  ;;  %vm714_vm2 = vcmask 64512   ;;  %v549_v21 = vshrl.u32 %v548_v17, 7 }
  0xa0   : > { %1636 = vmatpush3.bf16.msra.mxu0 %v1804_v1  ;;  %v707_v12 = vld [vmem:[#allocation5 + $0x4] sm:$0xf]  ;;  %v719_v13 = vsel %vm714_vm2, %v706_v11, 0  ;;  %v2077_v15 = vmov 1983009808   ;;  %v2079_v38 = vmov 0  }
  0xa1   : > { %1637 = vmatprep.subr.bf16.mxu0 %v2072_v0  ;;  %v765_v14 = vsel %vm714_vm2, %v707_v12, 0  ;;  %1644 = vmatpush3.bf16.xpose.msra.mxu1 %v719_v13  ;;  %v546_v16 = vunpack.c.l.s4 %v2077_v15  ;;  %v2078_v18 = vmov 1934713408   ;;  %v709_v11 = vld [vmem:[#allocation5 + $0xc] sm:$0xf]  ;;  %p459_p11 = scmp.lt.s32.totalorder %s2056_s12, 1 }
  0xa2   : > { %1655 = vmatprep.subr.bf16.mxu1 %v2072_v0  ;;  %v563_v19 = vunpack.c.l.s4 %v2078_v18  ;;  %v857_v17 = vsel %vm714_vm2, %v709_v11, 0  ;;  %v710_v11 = vld [vmem:[#allocation7] sm:$0xf]  ;;  %vm966_vm5 = vcmask 1043456   ;;  %s1583_s29 = sshll.u32 %s2367_s7, 4  ;;  %vm958_vm6 = vcmask 60416  }
  0xa3   : > { %v547_v20 = vunpack.c.0.s8 %v546_v16  ;;  %s460_s25 = scalar_select %p459_p11, %s2056_s12, 1  ;;  %vm1297_vm7 = vcmask 130048   ;;  %vm1299_vm8 = vcmask 195584  }
  0xa4   : > { %1638 = vmatpush3.bf16.msra.mxu0 %v1805_v2  ;;  %v564_v22 = vunpack.c.0.s8 %v563_v19  ;;  %s2473_s8 = scalar_lea.vmem [#allocation11], %s1583_s29  ;;  %s2080_s18 = smov 16  }
  0xa5   : > { %1649 = vmatprep.subr.bf16.mxu0 %v2072_v0  ;;  %v2401_v23 = vsub.s32 %v547_v20, %v549_v21  ;;  %s1584_s24 = sshll.u32 %s460_s25, 1  ;;  %s1403_s15 = sshll.u32 %s2473_s8, 4  ;;  %s2527_s15 = int_to_ptr.vmem [resolvable:$true] %s1403_s15 }
  0xa6   : > { %v2404_v27 = vsub.s32 %v564_v22, %v549_v21  ;;  %s465_s16 = scalar_lea.vmem %s2614_s3, %s1584_s24  ;;  %s2660_s24 = sld [smem:[#allocation24_spill]] }
  0xa7   : > { %1640 = vmatmul.mubr.msk.bf16.vlgmr.msra.gmra.mrb[0].mxu0 %vm493_vm1, %v469_v3  ;;  %s1942_s29 = scalar_lea.vmem %s2527_s15, 256  ;;  %s2083_s23 = smov [#allocation11]  }
  0xa8   : > { %1651 = vmatprep.mubr.msk.bf16.mxu0 %vm2073_vm0, %v2072_v0  ;;  %p1943_p9 = scmp.ne.s32.totalorder %s2527_s15, %s1942_s29  ;;  %s1946_s1 = sshll.u32 %s2083_s23, 4  ;;  %s1947_s1 = int_to_ptr.vmem [resolvable:$false] %s1946_s1 }
  0xa9   : > { %s1948_s26 = scalar_lea.vmem %s1947_s1, 512  ;;  %p1949_p3 = scmp.lt.s32.totalorder %s2527_s15, %s1947_s1 }
  0xaa   : > { %p1944_p13 = pnand %p1943_p9, %p2317_p1  ;;  %p1950_p4 = scmp.lt.s32.totalorder %s1948_s26, %s1942_s29 }
  0xac   : > { %s2524_s27 = scalar_lea.hbm %s2660_s24, %s2190_s20  ;;  %p1945_p2 = pneg %p1944_p13 }
  0xad   : > { %1650 = vmatpush3.bf16.xpose.msra.mxu0 %v765_v14  ;;  %p1951_p8 = por %p1950_p4, %p1949_p3 }
  0xae   : > { %1661 = vmatprep.subr.bf16.mxu0 %v2072_v0 }
  0xaf   : > { %p1952_p0 = pnand %p1951_p8, %p1945_p2 }
 0x17a   : > { %v531_v5 = vpop.f32.mrb[0].mxu0 }
 0x17b   : > { %v532_v6 = vadd.f32 %v1585_v4, %v531_v5  ;;  %v1641_v7 = vpop.f32.mrb[1].mxu0 }
 0x17c   : > { %v534_v8 = vpop.f32.mrb[2].mxu0 }
 0x17d   : > { %v537_v9 = vpack.c.bf16 %v532_v6, %v532_v6  ;;  %v1642_v10 = vpop.f32.mrb[3].mxu0 }
 0x17f   : > { %543 = vrot.lane.b32.xlu1 %v537_v9, %s2074_s21  ;;  %539 = vrot.lane.b32.xlu0 %v537_v9, %s2075_s19  ;;  %v551_v34 = vrot.slane %v537_v9, %v2401_v23  ;;  %s2081_s21 = smov 8   ;;  %s2082_s19 = smov 24  }
 0x183   : > { %541 = vrot.lane.b32.xlu0 %v537_v9, %s2076_s22  ;;  %v708_v9 = vld [vmem:[#allocation5 + $0x8] sm:$0xf] }
 0x184   : > { %v811_v13 = vsel %vm714_vm2, %v708_v9, 0 }
 0x1f1   : > { %v544_v24 = vpop.permute.xlu1 %543  ;;  %v540_v25 = vpop.permute.xlu0 %539 }
 0x1f2   : > { %v593_v26 = vrot.slane %v544_v24, %v2401_v23  ;;  %v585_v28 = vrot.slane %v540_v25, %v2401_v23  ;;  %v899_v25 = vld [vmem:[%s465_s16] sm:$0x3]  ;;  %s1375_s16 = scalar_lea.sflag [#allocation12], %s2367_s7 }
 0x1f3   : > { %vm900_vm3 = vnez %v899_v25 }
 0x1f4   : > { %v594_v29 = vcombine.low %v585_v28, %v593_v26  ;;  %v595_v30 = vcombine.high %v585_v28, %v593_v26  ;;  %v901_v26 = vsel %vm900_vm3, 16843009, %v2079_v38 }
 0x1f5   : > { %v542_v31 = vpop.permute.xlu0 %541  ;;  %v902_v28 = vunpack.c.0.s8 %v901_v26 }
 0x1f6   : > { %v602_v32 = vrot.slane %v594_v29, %v2404_v27  ;;  %v559_v33 = vrot.slane %v542_v31, %v2401_v23  ;;  %v609_v35 = vrot.slane %v595_v30, %v2404_v27 }
 0x1f7   : > { %vm2447_vm4 = vcmp.ne.s32.totalorder %v902_v28, 0 }
 0x1f8   : > { %v560_v36 = vcombine.low %v551_v34, %v559_v33  ;;  %v561_v37 = vcombine.high %v551_v34, %v559_v33  ;;  %v610_v39 = vcombine.high %v602_v32, %v2079_v38  ;;  %v611_v42 = vcombine.high %v609_v35, %v2079_v38 }
 0x1f9   : > { %v617_v43 = vshrl.u32 %v602_v32, 16  ;;  %v633_v49 = vshrl.u32 %v609_v35, 16 }
 0x1fa   : > { %v568_v40 = vrot.slane %v560_v36, %v2404_v27  ;;  %v575_v41 = vrot.slane %v561_v37, %v2404_v27  ;;  %v625_v48 = vshrl.u32 %v610_v39, 16  ;;  %v641_v56 = vshrl.u32 %v611_v42, 16 }
 0x1fc   : > { %v576_v44 = vcombine.high %v568_v40, %v2079_v38  ;;  %v577_v45 = vcombine.high %v575_v41, %v2079_v38  ;;  %v614_v46 = vpack.i.b16 %v602_v32, %v568_v40  ;;  %v616_v47 = vshrl.u32 %v568_v40, 16 }
 0x1fd   : > { %v630_v50 = vpack.i.b16 %v609_v35, %v575_v41  ;;  %v632_v51 = vshrl.u32 %v575_v41, 16 }
 0x1fe   : > { %v618_v52 = vpack.i.b16 %v617_v43, %v616_v47  ;;  %v622_v53 = vpack.i.b16 %v610_v39, %v576_v44  ;;  %v624_v54 = vshrl.u32 %v576_v44, 16  ;;  %v638_v55 = vpack.i.b16 %v611_v42, %v577_v45 }
 0x1ff   : > { %v634_v57 = vpack.i.b16 %v633_v49, %v632_v51  ;;  %v640_v58 = vshrl.u32 %v577_v45, 16  ;;  %v644_v59 = vcombine.low %v614_v46, %v630_v50 }
 0x200   : > { %v626_v60 = vpack.i.b16 %v625_v48, %v624_v54  ;;  %v652_v61 = vcombine.low %v622_v53, %v638_v55 }
 0x201   : > { %v642_v62 = vpack.i.b16 %v641_v56, %v640_v58  ;;  %v669_v63 = vcombine.low %v618_v52, %v634_v57  ;;  %v651_v1 = vrot.slane %v644_v59, %v2401_v23 }
 0x202   : > { %v659_v2 = vrot.slane %v652_v61, %v2401_v23 }
 0x203   : > { %v677_v3 = vcombine.low %v626_v60, %v642_v62  ;;  %v676_v5 = vrot.slane %v669_v63, %v2401_v23 }
 0x204   : > { %v660_v4 = vcombine.low %v651_v1, %v659_v2 }
 0x205   : > { %v684_v6 = vrot.slane %v677_v3, %v2401_v23 }
 0x206   : > { %v667_v7 = vrot.slane %v660_v4, %v2404_v27 }
 0x207   : > { %v685_v8 = vcombine.low %v676_v5, %v684_v6 }
 0x208   : > { %v697_v14 = vshrl.u32 %v667_v7, 16  ;;  %v668_v19 = vcombine.high %v667_v7, %v2079_v38 }
 0x209   : > { %v692_v10 = vrot.slane %v685_v8, %v2404_v27 }
 0x20a   : > { %v703_v22 = vshrl.u32 %v668_v19, 16 }
 0x20b   : > { %v696_v12 = vpack.i.b16 %v692_v10, %v667_v7  ;;  %v698_v15 = vshrl.u32 %v692_v10, 16  ;;  %v693_v18 = vcombine.high %v692_v10, %v2079_v38 }
 0x20d   : > { %1646 = vmatmul.mubr.msk.bf16.vlgmr.msra.gmra.mrb[0].mxu1 %vm714_vm2, %v696_v12  ;;  %v699_v16 = vpack.i.b16 %v698_v15, %v697_v14  ;;  %v704_v20 = vshrl.u32 %v693_v18, 16  ;;  %v702_v21 = vpack.i.b16 %v693_v18, %v668_v19  ;;  %v968_v12 = vsel %vm966_vm5, %v710_v11, 0 }
 0x20e   : > { %1656 = vmatpush3.bf16.xpose.msra.mxu1 %v811_v13  ;;  %1657 = vmatprep.mubr.msk.bf16.mxu1 %vm2073_vm0, %v2072_v0  ;;  %v711_v13 = vld [vmem:[#allocation7 + $0x4] sm:$0xf] }
 0x20f   : > { %1652 = vmatmul.mubr.msk.bf16.vlgmr.msra.gmra.mrb[4].mxu0 %vm714_vm2, %v699_v16  ;;  %1667 = vmatprep.subr.bf16.mxu1 %v2072_v0  ;;  %v705_v24 = vpack.i.b16 %v704_v20, %v703_v22  ;;  %v1014_v14 = vsel %vm966_vm5, %v711_v13, 0  ;;  %v712_v20 = vld [vmem:[#allocation7 + $0x8] sm:$0xf] }
 0x210   : > { %1662 = vmatpush3.bf16.xpose.msra.mxu0 %v857_v17  ;;  %1663 = vmatprep.mubr.msk.bf16.mxu0 %vm2073_vm0, %v2072_v0  ;;  %v1060_v28 = vsel %vm966_vm5, %v712_v20, 0 }
 0x211   : > { %1673 = vmatprep.subr.bf16.mxu0 %v2072_v0 }
 0x215   : > { %1658 = vmatmul.mubr.msk.bf16.vlgmr.msra.gmra.mrb[4].mxu1 %vm714_vm2, %v702_v21 }
 0x216   : > { %1669 = vmatprep.mubr.msk.bf16.mxu1 %vm2073_vm0, %v2072_v0  ;;  %1668 = vmatpush3.bf16.msra.mxu1 %v968_v12 }
 0x217   : > { %1664 = vmatmul.mubr.msk.bf16.vlgmr.msra.gmra.mrb[8].mxu0 %vm714_vm2, %v705_v24  ;;  %1679 = vmatprep.subr.bf16.mxu1 %v2072_v0  ;;  %v713_v24 = vld [vmem:[#allocation7 + $0xc] sm:$0xf] }
 0x218   : > { %1675 = vmatprep.mubr.msk.bf16.mxu0 %vm2073_vm0, %v2072_v0  ;;  %1674 = vmatpush3.bf16.msra.mxu0 %v1014_v14 }
 0x219   : > { %1685 = vmatprep.subr.bf16.mxu0 %v2072_v0 }
 0x2e0   : > { %v755_v30 = vpop.f32.mrb[0].mxu1 }
 0x2e1   : > { %v906_v31 = vsel %vm2447_vm4, -1e+09, %v755_v30  ;;  %v1647_v32 = vpop.f32.mrb[1].mxu1  ;;  %v1106_v30 = vsel %vm966_vm5, %v713_v24, 0 }
 0x2e2   : > { %v758_v33 = vpop.f32.mrb[2].mxu1  ;;  %v801_v34 = vpop.f32.mrb[4].mxu0  ;;  %v910_v35 = vsel %vm714_vm2, %v906_v31, -inf }
 0x2e3   : > { %v907_v36 = vsel %vm2447_vm4, -1e+09, %v801_v34  ;;  %911 = vmax.xlane.f32.xlu1 %v910_v35  ;;  %v1648_v37 = vpop.f32.mrb[3].mxu1  ;;  %v1653_v38 = vpop.f32.mrb[5].mxu0 }
 0x2e4   : > { %v804_v39 = vpop.f32.mrb[6].mxu0  ;;  %v913_v40 = vsel %vm714_vm2, %v907_v36, -inf  ;;  %v1806_v37 = vld [vmem:[%s2617_s6] sm:$0xff]  }
 0x2e5   : > { %914 = vmax.xlane.f32.xlu0 %v913_v40  ;;  %v1654_v41 = vpop.f32.mrb[7].mxu0 }
 0x2e8   : > { %v847_v42 = vpop.f32.mrb[4].mxu1 }
 0x2e9   : > { %v908_v43 = vsel %vm2447_vm4, -1e+09, %v847_v42  ;;  %v1659_v44 = vpop.f32.mrb[5].mxu1 }
 0x2ea   : > { %v850_v45 = vpop.f32.mrb[6].mxu1  ;;  %v893_v46 = vpop.f32.mrb[8].mxu0  ;;  %v916_v47 = vsel %vm714_vm2, %v908_v43, -inf }
 0x2eb   : > { %v909_v48 = vsel %vm2447_vm4, -1e+09, %v893_v46  ;;  %v1660_v49 = vpop.f32.mrb[7].mxu1  ;;  %917 = vmax.xlane.f32.xlu0 %v916_v47  ;;  %v1665_v50 = vpop.f32.mrb[9].mxu0 }
 0x2ec   : > { %v896_v51 = vpop.f32.mrb[10].mxu0  ;;  %v919_v52 = vsel %vm714_vm2, %v909_v48, -inf }
 0x2ed   : > { %920 = vmax.xlane.f32.xlu1 %v919_v52  ;;  %v1666_v53 = vpop.f32.mrb[11].mxu0 }
 0x370   : > { %v912_v54 = vpop.xlane.xlu1 %911 }
 0x371   : > { %v922_v55 = vsub.f32 %v906_v31, %v912_v54 }
 0x372   : > { %v915_v56 = vpop.xlane.xlu0 %914 }
 0x373   : > { %v926_v57 = vmul.f32 1.442695, %v922_v55  ;;  %v923_v58 = vsub.f32 %v907_v36, %v915_v56 }
 0x375   : > { %1808 = vpow2.f32 %v926_v57  ;;  %v928_v59 = vmul.f32 1.442695, %v923_v58 }
 0x377   : > { %1810 = vpow2.f32 %v928_v59 }
 0x378   : > { %v918_v60 = vpop.xlane.xlu0 %917 }
 0x379   : > { %v924_v61 = vsub.f32 %v908_v43, %v918_v60 }
 0x37a   : > { %v921_v62 = vpop.xlane.xlu1 %920 }
 0x37b   : > { %v930_v63 = vmul.f32 1.442695, %v924_v61  ;;  %v925_v1 = vsub.f32 %v909_v48, %v921_v62 }
 0x37d   : > { %1812 = vpow2.f32 %v930_v63  ;;  %v932_v2 = vmul.f32 1.442695, %v925_v1 }
 0x37f   : > { %v1809_v3 = vpop.eup %1808  ;;  %1814 = vpow2.f32 %v932_v2  ;;  %v1807_v2 = vld [vmem:[%s2617_s6 + $0x8] sm:$0xff]  }
 0x380   : > { %v934_v4 = vsel %vm714_vm2, %v1809_v3, 0.0 }
 0x381   : > { %v1811_v5 = vpop.eup %1810  ;;  %935 = vadd.xlane.f32.xlu0 %v934_v4 }
 0x382   : > { %v937_v6 = vsel %vm714_vm2, %v1811_v5, 0.0 }
 0x383   : > { %938 = vadd.xlane.f32.xlu1 %v937_v6 }
 0x387   : > { %v1813_v7 = vpop.eup %1812 }
 0x388   : > { %v940_v8 = vsel %vm714_vm2, %v1813_v7, 0.0 }
 0x389   : > { %v1815_v9 = vpop.eup %1814  ;;  %941 = vadd.xlane.f32.xlu0 %v940_v8 }
 0x38a   : > { %v943_v10 = vsel %vm714_vm2, %v1815_v9, 0.0 }
 0x38b   : > { %944 = vadd.xlane.f32.xlu1 %v943_v10 }
 0x40e   : > { %v936_v15 = vpop.xlane.xlu0 %935 }
 0x40f   : > { %1816 = vrcp.f32 %v936_v15 }
 0x410   : > { %v939_v16 = vpop.xlane.xlu1 %938 }
 0x411   : > { %1818 = vrcp.f32 %v939_v16 }
 0x416   : > { %v942_v17 = vpop.xlane.xlu0 %941 }
 0x417   : > { %1820 = vrcp.f32 %v942_v17 }
 0x418   : > { %v945_v18 = vpop.xlane.xlu1 %944 }
 0x419   : > { %v1817_v19 = vpop.eup %1816  ;;  %1822 = vrcp.f32 %v945_v18 }
 0x41a   : > { %v950_v21 = vmul.f32 %v1817_v19, %v1809_v3 }
 0x41b   : > { %v1819_v22 = vpop.eup %1818 }
 0x41c   : > { %v951_v25 = vmul.f32 %v1819_v22, %v1811_v5  ;;  %v954_v26 = vpack.c.bf16 %v950_v21, %v950_v21 }
 0x41e   : > { %959 = vst.msk [vmem:[%s2473_s8] sm:$0xf] %vm958_vm6, %v954_v26  ;;  %1670 = vmatmul.mubr.msk.bf16.vlgmr.msra.gmra.mrb[8].mxu1 %vm714_vm2, %v954_v26  ;;  %v955_v29 = vpack.c.bf16 %v951_v25, %v951_v25 }
 0x41f   : > { %1680 = vmatpush3.bf16.msra.mxu1 %v1060_v28  ;;  %1681 = vmatprep.mubr.msk.bf16.mxu1 %vm2073_vm0, %v2072_v0 }
 0x420   : > { %960 = vst.msk [vmem:[%s2473_s8 + $0x4] sm:$0xf] %vm958_vm6, %v955_v29  ;;  %1676 = vmatmul.mubr.msk.bf16.vlgmr.msra.gmra.mrb[12].mxu0 %vm714_vm2, %v955_v29  ;;  %1691 = vmatprep.subr.bf16.mxu1 %v2072_v0 }
 0x421   : > { %v1821_v31 = vpop.eup %1820  ;;  %1686 = vmatpush3.bf16.msra.mxu0 %v1106_v30  ;;  %1687 = vmatprep.mubr.msk.bf16.mxu0 %vm2073_vm0, %v2072_v0 }
 0x422   : > { %v952_v32 = vmul.f32 %v1821_v31, %v1813_v7 }
 0x423   : > { %v1823_v33 = vpop.eup %1822 }
 0x424   : > { %v953_v34 = vmul.f32 %v1823_v33, %v1815_v9  ;;  %v956_v35 = vpack.c.bf16 %v952_v32, %v952_v32 }
 0x426   : > { %961 = vst.msk [vmem:[%s2473_s8 + $0x8] sm:$0xf] %vm958_vm6, %v956_v35  ;;  %1682 = vmatmul.mubr.msk.bf16.vlgmr.msra.gmra.mrb[12].mxu1 %vm714_vm2, %v956_v35  ;;  %v957_v36 = vpack.c.bf16 %v953_v34, %v953_v34 }
 0x427   : > { %1695 = vmatprep.mubr.msk.bf16.mxu1 %vm2073_vm0, %v2072_v0  ;;  %1692 = vmatpush3.bf16.msra.mxu1 %v1806_v37 }
 0x428   : > { %962 = vst.msk [vmem:[%s2473_s8 + $0xc] sm:$0xf] %vm958_vm6, %v957_v36  ;;  %1688 = vmatmul.mubr.msk.bf16.vlgmr.msra.gmra.mrb[16].mxu0 %vm714_vm2, %v957_v36  ;;  %1693 = vmatprep.subr.bf16.mxu1 %v2072_v0 }
 0x42b   : > { %1694 = vmatpush3.bf16.msra.mxu1 %v1807_v2 }
 0x4f1   : > { %v1004_v38 = vpop.f32.mrb[8].mxu1 }
 0x4f2   : > { %v1671_v39 = vpop.f32.mrb[9].mxu1 }
 0x4f3   : > { %v1007_v40 = vpop.f32.mrb[10].mxu1  ;;  %v1050_v41 = vpop.f32.mrb[12].mxu0 }
 0x4f4   : > { %v1672_v42 = vpop.f32.mrb[11].mxu1  ;;  %v1677_v43 = vpop.f32.mrb[13].mxu0 }
 0x4f5   : > { %v1053_v44 = vpop.f32.mrb[14].mxu0 }
 0x4f6   : > { %v1678_v45 = vpop.f32.mrb[15].mxu0 }
 0x4f9   : > { %v1096_v46 = vpop.f32.mrb[12].mxu1 }
 0x4fa   : > { %v1148_v47 = vcombine.low %v1004_v38, %v1096_v46  ;;  %v1149_v48 = vcombine.high %v1004_v38, %v1096_v46  ;;  %v1683_v49 = vpop.f32.mrb[13].mxu1 }
 0x4fb   : > { %v1099_v50 = vpop.f32.mrb[14].mxu1  ;;  %v1142_v51 = vpop.f32.mrb[16].mxu0 }
 0x4fc   : > { %v1164_v52 = vcombine.low %v1050_v41, %v1142_v51  ;;  %v1165_v53 = vcombine.high %v1050_v41, %v1142_v51  ;;  %v1684_v54 = vpop.f32.mrb[15].mxu1  ;;  %v1689_v55 = vpop.f32.mrb[17].mxu0  ;;  %v1156_v0 = vrot.slane %v1148_v47, %v2401_v23  ;;  %v1163_v57 = vrot.slane %v1149_v48, %v2401_v23 }
 0x4fd   : > { %v1145_v56 = vpop.f32.mrb[18].mxu0 }
 0x4fe   : > { %v1172_v58 = vrot.slane %v1164_v52, %v2401_v23  ;;  %v1179_v59 = vrot.slane %v1165_v53, %v2401_v23  ;;  %v1690_v60 = vpop.f32.mrb[19].mxu0 }
 0x500   : > { %v1180_v61 = vcombine.low %v1156_v0, %v1172_v58  ;;  %v1181_v62 = vcombine.high %v1156_v0, %v1172_v58  ;;  %v1196_v63 = vcombine.low %v1163_v57, %v1179_v59  ;;  %v1197_v1 = vcombine.high %v1163_v57, %v1179_v59 }
 0x502   : > { %v1188_v3 = vrot.slane %v1180_v61, %v2404_v27  ;;  %v1195_v4 = vrot.slane %v1181_v62, %v2404_v27  ;;  %v1204_v5 = vrot.slane %v1196_v63, %v2404_v27  ;;  %v1211_v6 = vrot.slane %v1197_v1, %v2404_v27 }
 0x504   : > { %v1216_v7 = vcombine.low %v1188_v3, %v1195_v4  ;;  %v1597_v8 = vcombine.high %v1188_v3, %v1195_v4  ;;  %v1232_v9 = vcombine.low %v1204_v5, %v1211_v6  ;;  %v1598_v10 = vcombine.high %v1204_v5, %v1211_v6 }
 0x506   : > { %v1223_v11 = vrot.slane %v1216_v7, %v2401_v23  ;;  %v1231_v12 = vrot.slane %v1597_v8, %v2401_v23  ;;  %v1239_v13 = vrot.slane %v1232_v9, %v2401_v23  ;;  %v1247_v14 = vrot.slane %v1598_v10, %v2401_v23 }
 0x508   : > { %v1249_v15 = vcombine.high %v1223_v11, %v1231_v12  ;;  %v1265_v16 = vcombine.high %v1239_v13, %v1247_v14  ;;  %v1248_v17 = vcombine.low %v1223_v11, %v1231_v12  ;;  %v1264_v18 = vcombine.low %v1239_v13, %v1247_v14 }
 0x50a   : > { %v1263_v19 = vrot.slane %v1249_v15, %v2404_v27  ;;  %v1279_v20 = vrot.slane %v1265_v16, %v2404_v27  ;;  %v1256_v21 = vrot.slane %v1248_v17, %v2404_v27  ;;  %v1272_v22 = vrot.slane %v1264_v18, %v2404_v27 }
 0x50c   : > { %v1282_v24 = vcombine.low %v1263_v19, %v1279_v20  ;;  %v1281_v25 = vcombine.high %v1256_v21, %v1272_v22  ;;  %v1283_v26 = vcombine.high %v1263_v19, %v1279_v20  ;;  %v1280_v28 = vcombine.low %v1256_v21, %v1272_v22 }
 0x50e   : > { %1289 = vrot.lane.b32.xlu1 %v1282_v24, %s2080_s18  ;;  %1285 = vrot.lane.b32.xlu0 %v1281_v25, %s2081_s21 }
 0x512   : > { %1293 = vrot.lane.b32.xlu1 %v1283_v26, %s2082_s19 }
 0x580   : > { %v1290_v23 = vpop.permute.xlu1 %1289  ;;  %v1286_v29 = vpop.permute.xlu0 %1285 }
 0x581   : > { %v1296_v30 = vsel %vm714_vm2, %v1280_v28, %v1286_v29 }
 0x582   : > { %v1298_v31 = vsel %vm1297_vm7, %v1296_v30, %v1290_v23 }
 0x584   : > { %v1294_v27 = vpop.permute.xlu1 %1293 }
 0x585   : > { %v1300_v32 = vsel %vm1299_vm8, %v1298_v31, %v1294_v27 }
 0x586   : > { %v1301_v33 = vpack.c.bf16 %v1300_v32, %v1300_v32 }
 0x588   : > { %1696 = vmatmul.mubr.msk.bf16.vlgmr.msra.gmra.mrb[16].mxu1 %vm493_vm1, %v1301_v33 }
 0x589   : > { %1955 = shalt.err (!%p1952_p0)
}
 0x58a   : > { %s1956_s20 = scalar_lea.hbm %s2524_s27, 256  ;;  %s1960_s18 = scalar_lea.hbm %s2660_s24, 512 }
 0x58b   : > { %p1957_p10 = scmp.ne.s32.totalorder %s2524_s27, %s1956_s20  ;;  %p1961_p7 = scmp.lt.u32.totalorder %s2524_s27, %s2660_s24 }
 0x58c   : > { %p1962_p12 = scmp.lt.u32.totalorder %s1960_s18, %s1956_s20  ;;  %p1964_p9 = scmp.lt.u32.totalorder %s1956_s20, %s2524_s27 }
 0x58d   : > { %p1958_p5 = pnand %p1957_p10, %p2317_p1 }
 0x58e   : > { %p1963_p11 = por %p1962_p12, %p1961_p7 }
 0x58f   : > { %p1959_p6 = pneg %p1958_p5 }
 0x590   : > { %p1965_p13 = por %p1964_p9, %p1963_p11 }
 0x592   : > { %p1966_p2 = pnand %p1965_p13, %p1959_p6 }
 0x594   : > { %1969 = shalt.err (!%p1966_p2)
}
 0x595   : > { %s2084_s22 = smov 64   ;;  %s2085_s25 = smov 4  }
 0x596   : > { %1710 = dma.vmem_to_hbm [thread:$0]  (%p2317_p1), %s2527_s15, 256, %s2524_s27, %s1375_s16, %s2084_s22, %s2084_s22, %s2085_s25  }
 0x597   : > { %s1582_s29 = sshll.u32 %s2367_s7, 3  ;;  %s2661_s26 = sld [smem:[#allocation22_spill]] }
 0x598   : > { %s1605_s20 = sshll.u32 %s2056_s12, 7  ;;  %s451_s8 = scalar_lea.vmem [#allocation10], %s1582_s29 }
 0x599   : > { %s1389_s17 = sshll.u32 %s451_s8, 4  ;;  %s2662_s19 = sld [smem:[#allocation23_spill]]  ;;  %s2563_s17 = int_to_ptr.vmem [resolvable:$true] %s1389_s17 }
 0x59a   : > { %s1370_s12 = scalar_lea.sflag [#allocation4], %s2367_s7  ;;  %s1970_s27 = scalar_lea.vmem %s2563_s17, 128 }
 0x59b   : > { %p1971_p3 = scmp.ne.s32.totalorder %s2563_s17, %s1970_s27  ;;  %s2086_s15 = smov [#allocation10]  }
 0x59c   : > { %s1974_s16 = sshll.u32 %s2086_s15, 4  ;;  %s1975_s16 = int_to_ptr.vmem [resolvable:$false] %s1974_s16 }
 0x59d   : > { %v1599_v34 = vld [vmem:[%s2661_s26] ss:$0 sm:$0xff]  ;;  %p1972_p4 = pnand %p1971_p3, %p2317_p1  ;;  %s1976_s22 = scalar_lea.vmem %s1975_s16, 256 }
 0x59e   : > { %p1977_p0 = scmp.lt.s32.totalorder %s2563_s17, %s1975_s16  ;;  %p1978_p10 = scmp.lt.s32.totalorder %s1976_s22, %s1970_s27 }
 0x59f   : > { %s2561_s0 = scalar_lea.hbm %s2662_s19, %s1605_s20  ;;  %p1973_p8 = pneg %p1972_p4 }
 0x5a0   : > { %p1979_p5 = por %p1978_p10, %p1977_p0 }
 0x5a2   : > { %p1980_p6 = pnand %p1979_p5, %p1973_p8 }
 0x65b   : > { %v1362_v35 = vpop.f32.mrb[16].mxu1 }
 0x65c   : > { %v1363_v36 = vadd.f32 %v1599_v34, %v1362_v35  ;;  %v1697_v37 = vpop.f32.mrb[17].mxu1 }
 0x65d   : > { %v1365_v38 = vpop.f32.mrb[18].mxu1 }
 0x65e   : > { %v1698_v39 = vpop.f32.mrb[19].mxu1  ;;  %1368 = vst.msk [vmem:[%s451_s8] sm:$0xff] %vm493_vm1, %v1363_v36 }
 0x65f   : > { %1983 = shalt.err (!%p1980_p6)
}
 0x660   : > { %s1984_s7 = scalar_lea.hbm %s2561_s0, 128  ;;  %s1988_s23 = scalar_lea.hbm %s2662_s19, 256 }
 0x661   : > { %p1985_p7 = scmp.ne.s32.totalorder %s2561_s0, %s1984_s7  ;;  %p1989_p9 = scmp.lt.u32.totalorder %s2561_s0, %s2662_s19 }
 0x662   : > { %p1990_p13 = scmp.lt.u32.totalorder %s1988_s23, %s1984_s7  ;;  %p1992_p3 = scmp.lt.u32.totalorder %s1984_s7, %s2561_s0 }
 0x663   : > { %p1986_p12 = pnand %p1985_p7, %p2317_p1 }
 0x664   : > { %p1991_p2 = por %p1990_p13, %p1989_p9 }
 0x665   : > { %p1987_p11 = pneg %p1986_p12 }
 0x666   : > { %p1993_p4 = por %p1992_p3, %p1991_p2 }
 0x668   : > { %p1994_p8 = pnand %p1993_p4, %p1987_p11 }
 0x66a   : > { %1997 = shalt.err (!%p1994_p8)
}
 0x66b   : > { %1709 = dma.vmem_to_hbm [thread:$0]  (%p2317_p1), %s2563_s17, 128, %s2561_s0, %s1370_s12  }
 0x66c PF: > { %s2663_s20 = sld [smem:[#allocation18_spill]]  ;;  %s2664_s8 = sld [smem:[#allocation19_spill]] }
 0x66d   : > { %p2666_p10 = scmp.ge.s32.totalorder %s2064_s14, 2 }
 0x672   : > { %s1418_s18 = sand.u32 1, %s2663_s20   ;;  %p2665_p0 = scmp.ne.s32.totalorder %s2664_s8, 0 }
 0x673   : > { %s1419_s21 = scalar_lea.sflag [#allocation4], %s1418_s18 }
 0x674   : > { %p1728_p5 = pnand %p2666_p10, %p2665_p0 }
 0x676   : > { %2035 = dma.done.wait (!%p1728_p5), %s1419_s21, 128  }
 0x677   : > { %2037 = vsyncadd (!%p1728_p5), %s1419_s21, 4294967168  ;;  %s1428_s27 = scalar_lea.sflag [#allocation12], %s1418_s18 }
 0x678   : > { %2039 = dma.done.wait (!%p1728_p5), %s1428_s27, 256  }
 0x679   : > { %2041 = vsyncadd (!%p1728_p5), %s1428_s27, 4294967040  ;;  %s31_s14 = sadd.s32 1, %s2064_s14   ;;  %s2667_s30 = smov %s2048_s10 }
 0x67a   : > { %p28_p6 = scmp.ge.s32.totalorder %s31_s14, 4   ;;  %s2668_s10 = smov %s2052_s11 }
 0x67b   : > { %s2669_s11 = smov %s2324_s9  ;;  %s2670_s12 = smov %s2060_s13 }
 0x67c   : > { %s2671_s13 = smov %s2673_s28  ;;  %30 = sbr.rel (!%p28_p6) target bundleno = 16 (0x10), region = 131 }
 0x683   :  { %1433 = vsyncpa [#allocation3], 1 }
 0x684   :  { %1435 = vsyncpa [#allocation3 + $0x1], 1 }
 0x685   :  { %1436 = vsyncpa [#allocation6], 1 }
 0x686   :  { %1437 = vsyncpa [#allocation9], 1 }
 0x687   :  { %1438 = vsyncpa [#allocation4], 1 }
 0x688   :  { %1440 = vsyncpa [#allocation4 + $0x1], 1 }
 0x689   :  { %1441 = vsyncpa [#allocation12], 1 }
 0x68a   :  { %1443 = vsyncpa [#allocation12 + $0x1], 1 }

// kernel: tpu_custom_call.1
= control target key start
LH: loop header
LB: loop body
LE: loop exit
PB: predicated region body
PF: predicated region fallthrough
CT: control target
= control target key end

     0   :  { %s2689_s0 = inlined_call_operand.hbm [shape: bf16[2,8,32], index: 0, kind: input, shape index: {}]   ;;  %s2690_s1 = inlined_call_operand.hbm [shape: bf16[2,4,8,8], index: 1, kind: input, shape index: {}]   ;;  %s2691_s2 = inlined_call_operand.hbm [shape: bf16[2,4,8,8], index: 2, kind: input, shape index: {}]   ;;  %s2692_s3 = inlined_call_operand.vmem [shape: s8[2,8,8], index: 3, kind: input, shape index: {}]   ;;  %s2693_s4 = inlined_call_operand.hbm [shape: bf16[32,32], index: 4, kind: input, shape index: {}]   ;;  %s2694_s5 = inlined_call_operand.vmem [shape: f32[1,32], index: 5, kind: input, shape index: {}]   ;;  %s2695_s6 = inlined_call_operand.vmem [shape: bf16[32,32], index: 6, kind: input, shape index: {}]   ;;  %s2696_s7 = inlined_call_operand.vmem [shape: f32[1,32], index: 7, kind: input, shape index: {}]   ;;  %s2697_s8 = inlined_call_operand.hbm [shape: f32[2,8,32], index: 8, kind: output, shape index: {0}]   ;;  %s2698_s9 = inlined_call_operand.hbm [shape: bf16[2,4,8,8], index: 9, kind: output, shape index: {1}]  }
   0x1   :  { %2725 = sst [smem:[#allocation26_spill]] %s2690_s1 }
   0x2   :  { %2726 = sst [smem:[#allocation27_spill]] %s2696_s7 }
   0x3   :  { %2727 = sst [smem:[#allocation28_spill]] %s2697_s8 }
   0x4   :  { %2728 = sst [smem:[#allocation29_spill]] %s2698_s9 }
   0x5   :  { %15 = vsyncpa [#allocation3], 0 }
   0x6   :  { %17 = vsyncpa [#allocation3 + $0x1], 0 }
   0x7   :  { %18 = vsyncpa [#allocation6], 0 }
   0x8   :  { %20 = vsyncpa [#allocation6 + $0x1], 0 }
   0x9   :  { %21 = vsyncpa [#allocation9], 0 }
   0xa   :  { %22 = vsyncpa [#allocation4], 0 }
   0xb   :  { %24 = vsyncpa [#allocation4 + $0x1], 0 }
   0xc   :  { %25 = vsyncpa [#allocation12], 0 }
   0xd   :  { %27 = vsyncpa [#allocation12 + $0x1], 0  ;;  %s2191_s30 = smov 0   ;;  %s2193_s10 = smov 0  }
   0xe   :  { %s2195_s11 = smov 0   ;;  %s2197_s12 = smov 0  }
   0xf   :  { %s2199_s13 = smov 0   ;;  %s2201_s14 = smov 0  }
  0x10 LB: > { %2729 = sst [smem:[#allocation18_spill]] %s2098_s30  ;;  %s45_s15 = sadd.s32 1, %s2114_s13  ;;  %s2118_s14 = sphi %s2201_s14, %s33_s14   ;;  %s2114_s13 = sphi %s2199_s13, %s2771_s13   ;;  %s2110_s12 = sphi %s2197_s12, %s2770_s12   ;;  %s2106_s11 = sphi %s2195_s11, %s2769_s11   ;;  %s2102_s10 = sphi %s2193_s10, %s2773_s10   ;;  %s2098_s30 = sphi %s2191_s30, %s2772_s30  }
  0x11   : > { %2730 = sst [smem:[#allocation19_spill]] %s2106_s11  ;;  %s54_s16 = sadd.s32 1, %s2106_s11 }
  0x12   : > { %2731 = sst [smem:[#allocation20_spill]] %s2114_s13  ;;  %p47_p0 = scmp.ge.s32.totalorder %s45_s15, 2 }
  0x13   : > { %2732 = sst [smem:[#allocation21_spill]] %s2118_s14  ;;  %p2701_p1 = scmp.ne.s32.totalorder %s2106_s11, %s2102_s10 }
  0x14   : > { %p62_p2 = scmp.eq.s32.totalorder %s2118_s14, 0  ;;  %s2775_s15 = smov (%p47_p0, %s45_s15), 0 }
  0x15   : > { %2733 = sst [smem:[#allocation22_spill]] %s2775_s15  ;;  %s49_s17 = ssub.s32 %s2114_s13, %s2775_s15 }
  0x16   : > { %p63_p3 = por %p62_p2, %p2701_p1  ;;  %p52_p5 = scmp.eq.s32.totalorder %s49_s17, 0 }
  0x17   : > { %p1791_p6 = scmp.lt.s32.totalorder %s2118_s14, 2  ;;  %s2236_s18 = sand.u32 1, %s2106_s11  }
  0x18   : > { %s352_s19 = sand.u32 1, %s2118_s14   ;;  %s2699_s22 = sshll.u32 %s2236_s18, 4 }
  0x19   : > { %s2240_s20 = scalar_select %p52_p5, %s2106_s11, %s54_s16  }
  0x1a   : > { %p2242_p7 = pnand %p1791_p6, %p63_p3  ;;  %s2700_s23 = sshll.u32 %s2114_s13, 8 }
  0x1b   : > { %2734 = sst [smem:[#allocation23_spill]] %s2240_s20  ;;  %s2736_s1 = sld [smem:[#allocation26_spill]] }
  0x1c   : > { %s2735_s21 = scalar_select %p2242_p7, 1, 0 }
  0x1d   : > { %s356_s27 = scalar_lea.vmem [#allocation5], %s2699_s22  ;;  %s2259_s29 = scalar_lea.sflag [#allocation6], %s352_s19 }
  0x1e   : > { %s363_s28 = sshll.u32 %s356_s27, 4  ;;  %p2265_p9 = pneg %p2242_p7  ;;  %s2257_s28 = int_to_ptr.vmem [resolvable:$true] %s363_s28 }
  0x20   : > { %s2737_s17 = scalar_select %p2265_p9, 1, 0 }
  0x21   : > { %s2253_s26 = scalar_lea.hbm %s2736_s1, %s2700_s23  ;;  %s1883_s22 = scalar_lea.hbm %s2736_s1, 512 }
  0x22   : > { %s1878_s16 = scalar_lea.hbm %s2253_s26, 256  ;;  %p1884_p12 = scmp.lt.u32.totalorder %s2253_s26, %s2736_s1 }
  0x23   : > { %p1879_p8 = scmp.ne.s32.totalorder %s2253_s26, %s1878_s16  ;;  %p1885_p13 = scmp.lt.u32.totalorder %s1883_s22, %s1878_s16 }
  0x24   : > { %p1887_p2 = scmp.lt.u32.totalorder %s1878_s16, %s2253_s26 }
  0x25   : > { %p1881_p10 = pnand %p2265_p9, %p1879_p8  ;;  %p1886_p0 = por %p1885_p13, %p1884_p12 }
  0x27   : > { %p1882_p11 = pneg %p1881_p10  ;;  %p1888_p3 = por %p1887_p2, %p1886_p0 }
  0x29   : > { %p1889_p5 = pnand %p1888_p3, %p1882_p11 }
  0x2b   : > { %1892 = shalt.err (!%p1889_p5)
}
  0x2c   : > { %s1893_s19 = scalar_lea.vmem %s2257_s28, 256  ;;  %s2120_s24 = smov [#allocation5]  }
  0x2d   : > { %p1894_p6 = scmp.ne.s32.totalorder %s2257_s28, %s1893_s19  ;;  %s1898_s25 = sshll.u32 %s2120_s24, 4  ;;  %s1899_s25 = int_to_ptr.vmem [resolvable:$false] %s1898_s25 }
  0x2e   : > { %s1900_s23 = scalar_lea.vmem %s1899_s25, 512  ;;  %p1901_p4 = scmp.lt.s32.totalorder %s2257_s28, %s1899_s25 }
  0x2f   : > { %p1896_p8 = pnand %p1894_p6, %p2265_p9  ;;  %p1902_p1 = scmp.lt.s32.totalorder %s1900_s23, %s1893_s19 }
  0x31   : > { %p1897_p10 = pneg %p1896_p8  ;;  %p1903_p12 = por %p1902_p1, %p1901_p4 }
  0x33   : > { %p1904_p13 = pnand %p1903_p12, %p1897_p10 }
  0x35   : > { %1907 = shalt.err (!%p1904_p13)
}
  0x36   : > { %s2704_s22 = smov 64   ;;  %s2706_s16 = smov 4  }
  0x37   : > { %1779 = dma.hbm_to_vmem [thread:$0]  (!%p2242_p7), %s2253_s26, 256, %s2257_s28, %s2259_s29, %s2704_s22, %s2704_s22, %s2706_s16  }
  0x38   : > { %s2738_s27 = sshll.u32 %s2114_s13, 8  ;;  %s2739_s23 = sshll.u32 %s2236_s18, 4 }
  0x39   : > { %s2297_s25 = scalar_lea.hbm %s2691_s2, %s2738_s27  ;;  %s377_s1 = scalar_lea.vmem [#allocation7], %s2739_s23 }
  0x3a   : > { %s384_s15 = sshll.u32 %s377_s1, 4  ;;  %s2302_s20 = sadd.s32 4294967295, %s2118_s14   ;;  %s2332_s15 = int_to_ptr.vmem [resolvable:$true] %s384_s15 }
  0x3b   : > { %s1621_s8 = sadd.s32 4294967294, %s2118_s14   ;;  %p67_p1 = scmp.ne.s32.totalorder %s2102_s10, %s2098_s30 }
  0x3c   : > { %p2717_p4 = scmp.eq.s32.totalorder %s2302_s20, 0  ;;  %p257_p11 = scmp.eq.s32.totalorder %s2302_s20, 1 }
  0x3d   : > { %p263_p0 = scmp.eq.s32.totalorder %s1621_s8, 1  ;;  %p1622_p2 = scmp.ge.s32.totalorder %s2118_s14, 1 }
  0x3e   : > { %p2312_p3 = por %p2717_p4, %p67_p1  ;;  %p2741_p5 = scmp.ne.s32.totalorder %s2106_s11, %s2102_s10 }
  0x3f   : > { %p2323_p8 = por %p263_p0, %p67_p1  ;;  %p298_p10 = scmp.lt.s32.totalorder %s2118_s14, 3 }
  0x40   : > { %s2740_s26 = scalar_select %p2312_p3, 1, 0 }
  0x41   : > { %p2319_p6 = por %p257_p11, %p2741_p5  ;;  %p2328_p12 = pnand %p1622_p2, %p298_p10 }
  0x42   : > { %s2744_s28 = scalar_select %p2323_p8, 1, 0 }
  0x43   : > { %s2742_s1 = scalar_select %p2319_p6, 1, 0 }
  0x44   : > { %2745 = sst [smem:[#allocation25_spill]] %s2744_s28  ;;  %s2123_s8 = smov [#allocation8]  }
  0x45   : > { %2743 = sst [smem:[#allocation24_spill]] %s2742_s1  ;;  %s310_s19 = sshll.u32 %s2123_s8, 4  ;;  %s2334_s19 = int_to_ptr.vmem [resolvable:$true] %s310_s19 }
  0x46   : > { %s2746_s27 = scalar_select %p2328_p12, 1, 0 }
  0x47   : > { %p1769_p13 = pneg %p2328_p12  ;;  %s1625_s24 = sshll.u32 %s2236_s18, 2 }
  0x48   : > { %s1626_s23 = sshll.u32 %s2114_s13, 6  ;;  %s337_s8 = scalar_lea.vmem [#allocation2], %s1625_s24 }
  0x49   : > { %p2342_p1 = pnand %p1769_p13, %p2717_p4  ;;  %s2349_s14 = scalar_lea.hbm %s2689_s0, %s1626_s23 }
  0x4a   : > { %s345_s28 = sshll.u32 %s337_s8, 4  ;;  %s1908_s9 = scalar_lea.hbm %s2693_s4, 256  ;;  %s2351_s28 = int_to_ptr.vmem [resolvable:$true] %s345_s28 }
  0x4b   : > { %p1909_p11 = scmp.ne.s32.totalorder %s2693_s4, %s1908_s9  ;;  %p1910_p0 = pneg %p2342_p1 }
  0x4c   : > { %p1915_p10 = scmp.lt.u32.totalorder %s1908_s9, %s2693_s4 }
  0x4d   : > { %p1911_p2 = pnand %p1910_p0, %p1909_p11 }
  0x4f   : > { %p1912_p5 = pneg %p1911_p2 }
  0x51   : > { %p1917_p13 = pnand %p1915_p10, %p1912_p5 }
  0x53   : > { %1920 = shalt.err (!%p1917_p13)
}
  0x54   : > { %s1921_s24 = scalar_lea.vmem %s2334_s19, 256  ;;  %p1929_p3 = scmp.lt.s32.totalorder %s2334_s19, %s2334_s19 }
  0x55   : > { %p1922_p4 = scmp.ne.s32.totalorder %s2334_s19, %s1921_s24  ;;  %p1930_p12 = scmp.lt.s32.totalorder %s1921_s24, %s1921_s24 }
  0x57   : > { %p1924_p8 = pnand %p1922_p4, %p1910_p0  ;;  %p1931_p7 = por %p1930_p12, %p1929_p3 }
  0x59   : > { %p1925_p6 = pneg %p1924_p8 }
  0x5b   : > { %p1932_p9 = pnand %p1931_p7, %p1925_p6 }
  0x5d   : > { %1935 = shalt.err (!%p1932_p9)
}
  0x5e   : > { %s2748_s7 = smov 4   ;;  %s2749_s30 = smov 64  }
  0x5f   : > { %1772 = dma.hbm_to_vmem [thread:$0]  (!%p2342_p1), %s2693_s4, 256, %s2334_s19, [#allocation9], %s2749_s30, %s2749_s30, %s2748_s7  }
  0x60   : > { %s334_s1 = scalar_lea.sflag [#allocation3], %s2236_s18  ;;  %s1936_s23 = scalar_lea.hbm %s2349_s14, 64 }
  0x61   : > { %p1937_p7 = scmp.ne.s32.totalorder %s2349_s14, %s1936_s23  ;;  %p2750_p9 = scmp.ne.s32.totalorder %s2737_s17, 0 }
  0x62   : > { %s1941_s11 = scalar_lea.hbm %s2689_s0, 128  ;;  %p1942_p6 = scmp.lt.u32.totalorder %s2349_s14, %s2689_s0 }
  0x63   : > { %p1939_p4 = pnand %p1937_p7, %p2750_p9  ;;  %p1943_p8 = scmp.lt.u32.totalorder %s1941_s11, %s1936_s23 }
  0x64   : > { %p1945_p11 = scmp.lt.u32.totalorder %s1936_s23, %s2349_s14 }
  0x65   : > { %p1940_p3 = pneg %p1939_p4  ;;  %p1944_p12 = por %p1943_p8, %p1942_p6 }
  0x67   : > { %p1946_p0 = por %p1945_p11, %p1944_p12 }
  0x69   : > { %p1947_p2 = pnand %p1946_p0, %p1940_p3 }
  0x6b   : > { %1950 = shalt.err (!%p1947_p2)
}
  0x6c   : > { %s1951_s18 = scalar_lea.vmem %s2351_s28, 64  ;;  %s2124_s19 = smov [#allocation2]  }
  0x6d   : > { %p1952_p1 = scmp.ne.s32.totalorder %s2351_s28, %s1951_s18  ;;  %s1956_s9 = sshll.u32 %s2124_s19, 4  ;;  %s1957_s9 = int_to_ptr.vmem [resolvable:$false] %s1956_s9 }
  0x6e   : > { %s1958_s13 = scalar_lea.vmem %s1957_s9, 128  ;;  %p1959_p13 = scmp.lt.s32.totalorder %s2351_s28, %s1957_s9 }
  0x6f   : > { %p1954_p5 = pnand %p1952_p1, %p2750_p9  ;;  %p1960_p7 = scmp.lt.s32.totalorder %s1958_s13, %s1951_s18 }
  0x71   : > { %p1955_p10 = pneg %p1954_p5  ;;  %p1961_p4 = por %p1960_p7, %p1959_p13 }
  0x73   : > { %p1962_p6 = pnand %p1961_p4, %p1955_p10 }
  0x75   : > { %1965 = shalt.err (!%p1962_p6)
}
  0x76   : > { %p2751_p3 = scmp.ne.s32.totalorder %s2735_s21, 0  ;;  %s1966_s23 = scalar_lea.hbm %s2297_s25, 256 }
  0x77   : > { %p1967_p8 = scmp.ne.s32.totalorder %s2297_s25, %s1966_s23  ;;  %s1971_s11 = scalar_lea.hbm %s2691_s2, 512 }
  0x78   : > { %1776 = dma.hbm_to_vmem [thread:$0]  (!%p2751_p3), %s2349_s14, 64, %s2351_s28, %s334_s1  }
  0x79   : > { %p1969_p12 = pnand %p1967_p8, %p2750_p9  ;;  %p1972_p0 = scmp.lt.u32.totalorder %s2297_s25, %s2691_s2 }
  0x7a   : > { %p1973_p2 = scmp.lt.u32.totalorder %s1971_s11, %s1966_s23  ;;  %p1975_p5 = scmp.lt.u32.totalorder %s1966_s23, %s2297_s25 }
  0x7b   : > { %p1970_p11 = pneg %p1969_p12 }
  0x7c   : > { %p1974_p1 = por %p1973_p2, %p1972_p0 }
  0x7e   : > { %p1976_p10 = por %p1975_p5, %p1974_p1 }
  0x80   : > { %p1977_p13 = pnand %p1976_p10, %p1970_p11 }
  0x82   : > { %1980 = shalt.err (!%p1977_p13)
}
  0x83   : > { %s1981_s14 = scalar_lea.vmem %s2332_s15, 256  ;;  %s2125_s28 = smov [#allocation7]  }
  0x84   : > { %p1982_p7 = scmp.ne.s32.totalorder %s2332_s15, %s1981_s14  ;;  %s1986_s1 = sshll.u32 %s2125_s28, 4  ;;  %s1987_s1 = int_to_ptr.vmem [resolvable:$false] %s1986_s1 }
  0x85   : > { %s1988_s18 = scalar_lea.vmem %s1987_s1, 512  ;;  %p1989_p8 = scmp.lt.s32.totalorder %s2332_s15, %s1987_s1 }
  0x86   : > { %p1984_p4 = pnand %p1982_p7, %p2750_p9  ;;  %p1990_p12 = scmp.lt.s32.totalorder %s1988_s18, %s1981_s14 }
  0x88   : > { %p1985_p6 = pneg %p1984_p4  ;;  %p1991_p0 = por %p1990_p12, %p1989_p8 }
  0x8a   : > { %p1992_p2 = pnand %p1991_p0, %p1985_p6 }
  0x8c   : > { %1995 = shalt.err (!%p1992_p2)
}
  0x8d   : > { %1782 = dma.hbm_to_vmem [thread:$0]  (!%p2751_p3), %s2297_s25, 256, %s2332_s15, %s2259_s29, %s2749_s30, %s2749_s30, %s2748_s7  }
  0x8e   : > { %p2752_p9 = scmp.ne.s32.totalorder %s2746_s27, 0 }
  0x8f   : > { %s2427_s17 = sand.u32 (!%p2752_p9), 1, %s2102_s10   ;;  %p2753_p11 = scmp.ne.s32.totalorder (!%p2752_p9), %s2740_s26, 0 }
  0x90   : > { %406 = sbr.rel (%p2752_p9) target bundleno = 1645 (0x66d), region = 52  ;;  %s1634_s19 = sshll.u32 (!%p2752_p9), %s2427_s17, 2 }
  0x91   : > { %s409_s9 = scalar_lea.sflag (!%p2752_p9), [#allocation3], %s2427_s17  ;;  %s412_s13 = scalar_lea.vmem (!%p2752_p9), [#allocation2], %s1634_s19 }
  0x97   : > { %2077 = dma.done.wait (%p2753_p11), %s409_s9, 64  }
  0x98   : > { %2079 = vsyncadd (%p2753_p11), %s409_s9, 4294967232  ;;  %s417_s15 = sand.u32 1, %s2302_s20   ;;  %s2437_s21 = sshll.u32 %s2427_s17, 4 }
  0x99   : > { %s418_s29 = scalar_lea.sflag [#allocation6], %s417_s15  ;;  %s2440_s25 = scalar_lea.vmem [#allocation5], %s2437_s21 }
  0x9a   : > { %2081 = dma.done.wait (%p2753_p11), %s418_s29, 512  }
  0x9b   : > { %2083 = vsyncadd (%p2753_p11), %s418_s29, 4294966784  ;;  %s2447_s27 = scalar_lea.vmem [#allocation7], %s2437_s21  ;;  %p2754_p3 = scmp.eq.s32.totalorder %s2302_s20, 0 }
  0x9d   : > { %2085 = dma.done.wait (%p2754_p3), [#allocation9], 256   ;;  %p2755_p1 = pmov %p2754_p3 }
  0x9e   : > { %v2126_v0 = vmov 0.0   ;;  %vm2127_vm0 = vmmov 0   ;;  %v1858_v1 = vld [vmem:[#allocation8] sm:$0xff]   ;;  %v1859_v2 = vld [vmem:[#allocation8 + $0x8] sm:$0xff]   ;;  %v501_v3 = vld [vmem:[%s412_s13] sm:$0xf]  ;;  %v580_v17 = vlaneseq }
  0x9f   : > { %2087 = vsyncadd (%p2755_p1), [#allocation9], 4294967040  ;;  %1691 = vmatprep.subr.bf16.mxu0 %v2126_v0  ;;  %1695 = vmatprep.mubr.msk.bf16.mxu0 %vm2127_vm0, %v2126_v0  ;;  %vm525_vm1 = vcmask 261120   ;;  %v1641_v4 = vld [vmem:[%s2694_s5] ss:$0 sm:$0xff]  ;;  %s2128_s7 = smov 104  }
  0xa0   : > { %1699 = vmatprep.subr.bf16.mxu1 %v2126_v0  ;;  %1701 = vmatprep.mubr.msk.bf16.mxu1 %vm2127_vm0, %v2126_v0  ;;  %s2129_s30 = smov 120   ;;  %s2130_s23 = smov 112   ;;  %v738_v11 = vld [vmem:[%s2440_s25] sm:$0xf]  ;;  %vm746_vm2 = vcmask 64512   ;;  %v581_v21 = vshrl.u32 %v580_v17, 7 }
  0xa1   : > { %1692 = vmatpush3.bf16.msra.mxu0 %v1858_v1  ;;  %v739_v12 = vld [vmem:[%s2440_s25 + $0x4] sm:$0xf]  ;;  %v751_v13 = vsel %vm746_vm2, %v738_v11, 0  ;;  %v2131_v15 = vmov 1983009808   ;;  %v2133_v38 = vmov 0  }
  0xa2   : > { %1693 = vmatprep.subr.bf16.mxu0 %v2126_v0  ;;  %v797_v14 = vsel %vm746_vm2, %v739_v12, 0  ;;  %1700 = vmatpush3.bf16.xpose.msra.mxu1 %v751_v13  ;;  %v578_v16 = vunpack.c.l.s4 %v2131_v15  ;;  %v2132_v18 = vmov 1934713408   ;;  %v741_v11 = vld [vmem:[%s2440_s25 + $0xc] sm:$0xf]  ;;  %p491_p5 = scmp.lt.s32.totalorder %s2110_s12, 1 }
  0xa3   : > { %1711 = vmatprep.subr.bf16.mxu1 %v2126_v0  ;;  %v595_v19 = vunpack.c.l.s4 %v2132_v18  ;;  %v889_v17 = vsel %vm746_vm2, %v741_v11, 0  ;;  %v742_v11 = vld [vmem:[%s2447_s27] sm:$0xf]  ;;  %vm998_vm5 = vcmask 1043456   ;;  %vm990_vm6 = vcmask 60416   ;;  %s2551_s14 = scalar_lea.vmem [#allocation11], %s2437_s21 }
  0xa4   : > { %v579_v20 = vunpack.c.0.s8 %v578_v16  ;;  %s492_s22 = scalar_select %p491_p5, %s2110_s12, 1  ;;  %vm1329_vm7 = vcmask 130048   ;;  %vm1331_vm8 = vcmask 195584  }
  0xa5   : > { %1694 = vmatpush3.bf16.msra.mxu0 %v1859_v2  ;;  %v596_v22 = vunpack.c.0.s8 %v595_v19  ;;  %s2134_s9 = smov 16   ;;  %s2135_s13 = smov 8  }
  0xa6   : > { %1705 = vmatprep.subr.bf16.mxu0 %v2126_v0  ;;  %v2473_v23 = vsub.s32 %v579_v20, %v581_v21  ;;  %s1640_s8 = sshll.u32 %s492_s22, 1  ;;  %s2136_s15 = smov 24  }
  0xa7   : > { %v2476_v27 = vsub.s32 %v596_v22, %v581_v21  ;;  %s497_s24 = scalar_lea.vmem %s2692_s3, %s1640_s8  ;;  %s2758_s21 = sld [smem:[#allocation24_spill]] }
  0xa8   : > { %1696 = vmatmul.mubr.msk.bf16.vlgmr.msra.gmra.mrb[0].mxu0 %vm525_vm1, %v501_v3  ;;  %s1668_s29 = sshll.u32 %s2110_s12, 8  ;;  %s2759_s26 = sld [smem:[#allocation29_spill]] }
  0xa9   : > { %1707 = vmatprep.mubr.msk.bf16.mxu0 %vm2127_vm0, %v2126_v0  ;;  %s2137_s22 = smov [#allocation11]  }
  0xaa   : > { %s2000_s8 = sshll.u32 %s2137_s22, 4  ;;  %s2001_s8 = int_to_ptr.vmem [resolvable:$false] %s2000_s8 }
  0xab   : > { %s2002_s11 = scalar_lea.vmem %s2001_s8, 512 }
  0xad   : > { %p2760_p13 = scmp.ne.s32.totalorder %s2758_s21, 0 }
  0xae   : > { %1706 = vmatpush3.bf16.xpose.msra.mxu0 %v797_v14 }
  0xaf   : > { %1717 = vmatprep.subr.bf16.mxu0 %v2126_v0 }
 0x17b   : > { %v563_v5 = vpop.f32.mrb[0].mxu0 }
 0x17c   : > { %v564_v6 = vadd.f32 %v1641_v4, %v563_v5  ;;  %v1697_v7 = vpop.f32.mrb[1].mxu0 }
 0x17d   : > { %v566_v8 = vpop.f32.mrb[2].mxu0 }
 0x17e   : > { %v569_v9 = vpack.c.bf16 %v564_v6, %v564_v6  ;;  %v1698_v10 = vpop.f32.mrb[3].mxu0 }
 0x180   : > { %575 = vrot.lane.b32.xlu1 %v569_v9, %s2128_s7  ;;  %571 = vrot.lane.b32.xlu0 %v569_v9, %s2129_s30  ;;  %v583_v34 = vrot.slane %v569_v9, %v2473_v23  ;;  %s2603_s7 = scalar_lea.hbm %s2759_s26, %s1668_s29  ;;  %s1407_s30 = scalar_lea.sflag [#allocation12], %s2427_s17 }
 0x184   : > { %573 = vrot.lane.b32.xlu0 %v569_v9, %s2130_s23  ;;  %v740_v9 = vld [vmem:[%s2440_s25 + $0x8] sm:$0xf]  ;;  %s1435_s25 = sshll.u32 %s2551_s14, 4  ;;  %s2605_s25 = int_to_ptr.vmem [resolvable:$true] %s1435_s25 }
 0x185   : > { %v843_v13 = vsel %vm746_vm2, %v740_v9, 0  ;;  %s1996_s23 = scalar_lea.vmem %s2605_s25, 256  ;;  %p2003_p6 = scmp.lt.s32.totalorder %s2605_s25, %s2001_s8 }
 0x186   : > { %p1997_p10 = scmp.ne.s32.totalorder %s2605_s25, %s1996_s23  ;;  %p2004_p8 = scmp.lt.s32.totalorder %s2002_s11, %s1996_s23 }
 0x188   : > { %p1998_p7 = pnand %p1997_p10, %p2760_p13  ;;  %p2005_p12 = por %p2004_p8, %p2003_p6 }
 0x18a   : > { %p1999_p4 = pneg %p1998_p7 }
 0x18c   : > { %p2006_p0 = pnand %p2005_p12, %p1999_p4 }
 0x1f2   : > { %v576_v24 = vpop.permute.xlu1 %575  ;;  %v572_v25 = vpop.permute.xlu0 %571 }
 0x1f3   : > { %v625_v26 = vrot.slane %v576_v24, %v2473_v23  ;;  %v617_v28 = vrot.slane %v572_v25, %v2473_v23  ;;  %v931_v25 = vld [vmem:[%s497_s24] sm:$0x3] }
 0x1f4   : > { %vm932_vm3 = vnez %v931_v25 }
 0x1f5   : > { %v626_v29 = vcombine.low %v617_v28, %v625_v26  ;;  %v627_v30 = vcombine.high %v617_v28, %v625_v26  ;;  %v933_v26 = vsel %vm932_vm3, 16843009, %v2133_v38 }
 0x1f6   : > { %v574_v31 = vpop.permute.xlu0 %573  ;;  %v934_v28 = vunpack.c.0.s8 %v933_v26 }
 0x1f7   : > { %v634_v32 = vrot.slane %v626_v29, %v2476_v27  ;;  %v591_v33 = vrot.slane %v574_v31, %v2473_v23  ;;  %v641_v35 = vrot.slane %v627_v30, %v2476_v27 }
 0x1f8   : > { %vm2521_vm4 = vcmp.ne.s32.totalorder %v934_v28, 0 }
 0x1f9   : > { %v592_v36 = vcombine.low %v583_v34, %v591_v33  ;;  %v593_v37 = vcombine.high %v583_v34, %v591_v33  ;;  %v642_v39 = vcombine.high %v634_v32, %v2133_v38  ;;  %v643_v42 = vcombine.high %v641_v35, %v2133_v38 }
 0x1fa   : > { %v649_v43 = vshrl.u32 %v634_v32, 16  ;;  %v665_v49 = vshrl.u32 %v641_v35, 16 }
 0x1fb   : > { %v600_v40 = vrot.slane %v592_v36, %v2476_v27  ;;  %v607_v41 = vrot.slane %v593_v37, %v2476_v27  ;;  %v657_v48 = vshrl.u32 %v642_v39, 16  ;;  %v673_v56 = vshrl.u32 %v643_v42, 16 }
 0x1fd   : > { %v608_v44 = vcombine.high %v600_v40, %v2133_v38  ;;  %v609_v45 = vcombine.high %v607_v41, %v2133_v38  ;;  %v646_v46 = vpack.i.b16 %v634_v32, %v600_v40  ;;  %v648_v47 = vshrl.u32 %v600_v40, 16 }
 0x1fe   : > { %v662_v50 = vpack.i.b16 %v641_v35, %v607_v41  ;;  %v664_v51 = vshrl.u32 %v607_v41, 16 }
 0x1ff   : > { %v650_v52 = vpack.i.b16 %v649_v43, %v648_v47  ;;  %v654_v53 = vpack.i.b16 %v642_v39, %v608_v44  ;;  %v656_v54 = vshrl.u32 %v608_v44, 16  ;;  %v670_v55 = vpack.i.b16 %v643_v42, %v609_v45 }
 0x200   : > { %v666_v57 = vpack.i.b16 %v665_v49, %v664_v51  ;;  %v672_v58 = vshrl.u32 %v609_v45, 16  ;;  %v676_v59 = vcombine.low %v646_v46, %v662_v50 }
 0x201   : > { %v658_v60 = vpack.i.b16 %v657_v48, %v656_v54  ;;  %v684_v61 = vcombine.low %v654_v53, %v670_v55 }
 0x202   : > { %v674_v62 = vpack.i.b16 %v673_v56, %v672_v58  ;;  %v701_v63 = vcombine.low %v650_v52, %v666_v57  ;;  %v683_v1 = vrot.slane %v676_v59, %v2473_v23 }
 0x203   : > { %v691_v2 = vrot.slane %v684_v61, %v2473_v23 }
 0x204   : > { %v709_v3 = vcombine.low %v658_v60, %v674_v62  ;;  %v708_v5 = vrot.slane %v701_v63, %v2473_v23 }
 0x205   : > { %v692_v4 = vcombine.low %v683_v1, %v691_v2 }
 0x206   : > { %v716_v6 = vrot.slane %v709_v3, %v2473_v23 }
 0x207   : > { %v699_v7 = vrot.slane %v692_v4, %v2476_v27 }
 0x208   : > { %v717_v8 = vcombine.low %v708_v5, %v716_v6 }
 0x209   : > { %v729_v14 = vshrl.u32 %v699_v7, 16  ;;  %v700_v19 = vcombine.high %v699_v7, %v2133_v38 }
 0x20a   : > { %v724_v10 = vrot.slane %v717_v8, %v2476_v27 }
 0x20b   : > { %v735_v22 = vshrl.u32 %v700_v19, 16 }
 0x20c   : > { %v728_v12 = vpack.i.b16 %v724_v10, %v699_v7  ;;  %v730_v15 = vshrl.u32 %v724_v10, 16  ;;  %v725_v18 = vcombine.high %v724_v10, %v2133_v38 }
 0x20e   : > { %1702 = vmatmul.mubr.msk.bf16.vlgmr.msra.gmra.mrb[0].mxu1 %vm746_vm2, %v728_v12  ;;  %v731_v16 = vpack.i.b16 %v730_v15, %v729_v14  ;;  %v736_v20 = vshrl.u32 %v725_v18, 16  ;;  %v734_v21 = vpack.i.b16 %v725_v18, %v700_v19  ;;  %v1000_v12 = vsel %vm998_vm5, %v742_v11, 0 }
 0x20f   : > { %1712 = vmatpush3.bf16.xpose.msra.mxu1 %v843_v13  ;;  %1713 = vmatprep.mubr.msk.bf16.mxu1 %vm2127_vm0, %v2126_v0  ;;  %v743_v13 = vld [vmem:[%s2447_s27 + $0x4] sm:$0xf] }
 0x210   : > { %1708 = vmatmul.mubr.msk.bf16.vlgmr.msra.gmra.mrb[4].mxu0 %vm746_vm2, %v731_v16  ;;  %1723 = vmatprep.subr.bf16.mxu1 %v2126_v0  ;;  %v737_v24 = vpack.i.b16 %v736_v20, %v735_v22  ;;  %v1046_v14 = vsel %vm998_vm5, %v743_v13, 0  ;;  %v744_v20 = vld [vmem:[%s2447_s27 + $0x8] sm:$0xf] }
 0x211   : > { %1718 = vmatpush3.bf16.xpose.msra.mxu0 %v889_v17  ;;  %1719 = vmatprep.mubr.msk.bf16.mxu0 %vm2127_vm0, %v2126_v0  ;;  %v1092_v28 = vsel %vm998_vm5, %v744_v20, 0 }
 0x212   : > { %1729 = vmatprep.subr.bf16.mxu0 %v2126_v0 }
 0x216   : > { %1714 = vmatmul.mubr.msk.bf16.vlgmr.msra.gmra.mrb[4].mxu1 %vm746_vm2, %v734_v21 }
 0x217   : > { %1725 = vmatprep.mubr.msk.bf16.mxu1 %vm2127_vm0, %v2126_v0  ;;  %1724 = vmatpush3.bf16.msra.mxu1 %v1000_v12 }
 0x218   : > { %1720 = vmatmul.mubr.msk.bf16.vlgmr.msra.gmra.mrb[8].mxu0 %vm746_vm2, %v737_v24  ;;  %1735 = vmatprep.subr.bf16.mxu1 %v2126_v0  ;;  %v745_v24 = vld [vmem:[%s2447_s27 + $0xc] sm:$0xf] }
 0x219   : > { %1731 = vmatprep.mubr.msk.bf16.mxu0 %vm2127_vm0, %v2126_v0  ;;  %1730 = vmatpush3.bf16.msra.mxu0 %v1046_v14 }
 0x21a   : > { %1741 = vmatprep.subr.bf16.mxu0 %v2126_v0 }
 0x2e1   : > { %v787_v30 = vpop.f32.mrb[0].mxu1 }
 0x2e2   : > { %v938_v31 = vsel %vm2521_vm4, -1e+09, %v787_v30  ;;  %v1703_v32 = vpop.f32.mrb[1].mxu1  ;;  %v1138_v30 = vsel %vm998_vm5, %v745_v24, 0 }
 0x2e3   : > { %v790_v33 = vpop.f32.mrb[2].mxu1  ;;  %v833_v34 = vpop.f32.mrb[4].mxu0  ;;  %v942_v35 = vsel %vm746_vm2, %v938_v31, -inf }
 0x2e4   : > { %v939_v36 = vsel %vm2521_vm4, -1e+09, %v833_v34  ;;  %943 = vmax.xlane.f32.xlu1 %v942_v35  ;;  %v1704_v37 = vpop.f32.mrb[3].mxu1  ;;  %v1709_v38 = vpop.f32.mrb[5].mxu0 }
 0x2e5   : > { %v836_v39 = vpop.f32.mrb[6].mxu0  ;;  %v945_v40 = vsel %vm746_vm2, %v939_v36, -inf  ;;  %v1860_v37 = vld [vmem:[%s2695_s6] sm:$0xff]  }
 0x2e6   : > { %946 = vmax.xlane.f32.xlu0 %v945_v40  ;;  %v1710_v41 = vpop.f32.mrb[7].mxu0 }
 0x2e9   : > { %v879_v42 = vpop.f32.mrb[4].mxu1 }
 0x2ea   : > { %v940_v43 = vsel %vm2521_vm4, -1e+09, %v879_v42  ;;  %v1715_v44 = vpop.f32.mrb[5].mxu1 }
 0x2eb   : > { %v882_v45 = vpop.f32.mrb[6].mxu1  ;;  %v925_v46 = vpop.f32.mrb[8].mxu0  ;;  %v948_v47 = vsel %vm746_vm2, %v940_v43, -inf }
 0x2ec   : > { %v941_v48 = vsel %vm2521_vm4, -1e+09, %v925_v46  ;;  %v1716_v49 = vpop.f32.mrb[7].mxu1  ;;  %949 = vmax.xlane.f32.xlu0 %v948_v47  ;;  %v1721_v50 = vpop.f32.mrb[9].mxu0 }
 0x2ed   : > { %v928_v51 = vpop.f32.mrb[10].mxu0  ;;  %v951_v52 = vsel %vm746_vm2, %v941_v48, -inf }
 0x2ee   : > { %952 = vmax.xlane.f32.xlu1 %v951_v52  ;;  %v1722_v53 = vpop.f32.mrb[11].mxu0 }
 0x371   : > { %v944_v54 = vpop.xlane.xlu1 %943 }
 0x372   : > { %v954_v55 = vsub.f32 %v938_v31, %v944_v54 }
 0x373   : > { %v947_v56 = vpop.xlane.xlu0 %946 }
 0x374   : > { %v958_v57 = vmul.f32 1.442695, %v954_v55  ;;  %v955_v58 = vsub.f32 %v939_v36, %v947_v56 }
 0x376   : > { %1862 = vpow2.f32 %v958_v57  ;;  %v960_v59 = vmul.f32 1.442695, %v955_v58 }
 0x378   : > { %1864 = vpow2.f32 %v960_v59 }
 0x379   : > { %v950_v60 = vpop.xlane.xlu0 %949 }
 0x37a   : > { %v956_v61 = vsub.f32 %v940_v43, %v950_v60 }
 0x37b   : > { %v953_v62 = vpop.xlane.xlu1 %952 }
 0x37c   : > { %v962_v63 = vmul.f32 1.442695, %v956_v61  ;;  %v957_v1 = vsub.f32 %v941_v48, %v953_v62 }
 0x37e   : > { %1866 = vpow2.f32 %v962_v63  ;;  %v964_v2 = vmul.f32 1.442695, %v957_v1 }
 0x380   : > { %v1863_v3 = vpop.eup %1862  ;;  %1868 = vpow2.f32 %v964_v2  ;;  %v1861_v2 = vld [vmem:[%s2695_s6 + $0x8] sm:$0xff]  }
 0x381   : > { %v966_v4 = vsel %vm746_vm2, %v1863_v3, 0.0 }
 0x382   : > { %v1865_v5 = vpop.eup %1864  ;;  %967 = vadd.xlane.f32.xlu0 %v966_v4 }
 0x383   : > { %v969_v6 = vsel %vm746_vm2, %v1865_v5, 0.0 }
 0x384   : > { %970 = vadd.xlane.f32.xlu1 %v969_v6 }
 0x388   : > { %v1867_v7 = vpop.eup %1866 }
 0x389   : > { %v972_v8 = vsel %vm746_vm2, %v1867_v7, 0.0 }
 0x38a   : > { %v1869_v9 = vpop.eup %1868  ;;  %973 = vadd.xlane.f32.xlu0 %v972_v8 }
 0x38b   : > { %v975_v10 = vsel %vm746_vm2, %v1869_v9, 0.0 }
 0x38c   : > { %976 = vadd.xlane.f32.xlu1 %v975_v10 }
 0x40f   : > { %v968_v15 = vpop.xlane.xlu0 %967 }
 0x410   : > { %1870 = vrcp.f32 %v968_v15 }
 0x411   : > { %v971_v16 = vpop.xlane.xlu1 %970 }
 0x412   : > { %1872 = vrcp.f32 %v971_v16 }
 0x417   : > { %v974_v17 = vpop.xlane.xlu0 %973 }
 0x418   : > { %1874 = vrcp.f32 %v974_v17 }
 0x419   : > { %v977_v18 = vpop.xlane.xlu1 %976 }
 0x41a   : > { %v1871_v19 = vpop.eup %1870  ;;  %1876 = vrcp.f32 %v977_v18 }
 0x41b   : > { %v982_v21 = vmul.f32 %v1871_v19, %v1863_v3 }
 0x41c   : > { %v1873_v22 = vpop.eup %1872 }
 0x41d   : > { %v983_v25 = vmul.f32 %v1873_v22, %v1865_v5  ;;  %v986_v26 = vpack.c.bf16 %v982_v21, %v982_v21 }
 0x41f   : > { %991 = vst.msk [vmem:[%s2551_s14] sm:$0xf] %vm990_vm6, %v986_v26  ;;  %1726 = vmatmul.mubr.msk.bf16.vlgmr.msra.gmra.mrb[8].mxu1 %vm746_vm2, %v986_v26  ;;  %v987_v29 = vpack.c.bf16 %v983_v25, %v983_v25 }
 0x420   : > { %1736 = vmatpush3.bf16.msra.mxu1 %v1092_v28  ;;  %1737 = vmatprep.mubr.msk.bf16.mxu1 %vm2127_vm0, %v2126_v0 }
 0x421   : > { %992 = vst.msk [vmem:[%s2551_s14 + $0x4] sm:$0xf] %vm990_vm6, %v987_v29  ;;  %1732 = vmatmul.mubr.msk.bf16.vlgmr.msra.gmra.mrb[12].mxu0 %vm746_vm2, %v987_v29  ;;  %1747 = vmatprep.subr.bf16.mxu1 %v2126_v0 }
 0x422   : > { %v1875_v31 = vpop.eup %1874  ;;  %1742 = vmatpush3.bf16.msra.mxu0 %v1138_v30  ;;  %1743 = vmatprep.mubr.msk.bf16.mxu0 %vm2127_vm0, %v2126_v0 }
 0x423   : > { %v984_v32 = vmul.f32 %v1875_v31, %v1867_v7 }
 0x424   : > { %v1877_v33 = vpop.eup %1876 }
 0x425   : > { %v985_v34 = vmul.f32 %v1877_v33, %v1869_v9  ;;  %v988_v35 = vpack.c.bf16 %v984_v32, %v984_v32 }
 0x427   : > { %993 = vst.msk [vmem:[%s2551_s14 + $0x8] sm:$0xf] %vm990_vm6, %v988_v35  ;;  %1738 = vmatmul.mubr.msk.bf16.vlgmr.msra.gmra.mrb[12].mxu1 %vm746_vm2, %v988_v35  ;;  %v989_v36 = vpack.c.bf16 %v985_v34, %v985_v34 }
 0x428   : > { %1751 = vmatprep.mubr.msk.bf16.mxu1 %vm2127_vm0, %v2126_v0  ;;  %1748 = vmatpush3.bf16.msra.mxu1 %v1860_v37 }
 0x429   : > { %994 = vst.msk [vmem:[%s2551_s14 + $0xc] sm:$0xf] %vm990_vm6, %v989_v36  ;;  %1744 = vmatmul.mubr.msk.bf16.vlgmr.msra.gmra.mrb[16].mxu0 %vm746_vm2, %v989_v36  ;;  %1749 = vmatprep.subr.bf16.mxu1 %v2126_v0 }
 0x42c   : > { %1750 = vmatpush3.bf16.msra.mxu1 %v1861_v2 }
 0x4f2   : > { %v1036_v38 = vpop.f32.mrb[8].mxu1 }
 0x4f3   : > { %v1727_v39 = vpop.f32.mrb[9].mxu1 }
 0x4f4   : > { %v1039_v40 = vpop.f32.mrb[10].mxu1  ;;  %v1082_v41 = vpop.f32.mrb[12].mxu0 }
 0x4f5   : > { %v1728_v42 = vpop.f32.mrb[11].mxu1  ;;  %v1733_v43 = vpop.f32.mrb[13].mxu0 }
 0x4f6   : > { %v1085_v44 = vpop.f32.mrb[14].mxu0 }
 0x4f7   : > { %v1734_v45 = vpop.f32.mrb[15].mxu0 }
 0x4fa   : > { %v1128_v46 = vpop.f32.mrb[12].mxu1 }
 0x4fb   : > { %v1180_v47 = vcombine.low %v1036_v38, %v1128_v46  ;;  %v1181_v48 = vcombine.high %v1036_v38, %v1128_v46  ;;  %v1739_v49 = vpop.f32.mrb[13].mxu1 }
 0x4fc   : > { %v1131_v50 = vpop.f32.mrb[14].mxu1  ;;  %v1174_v51 = vpop.f32.mrb[16].mxu0 }
 0x4fd   : > { %v1196_v52 = vcombine.low %v1082_v41, %v1174_v51  ;;  %v1197_v53 = vcombine.high %v1082_v41, %v1174_v51  ;;  %v1740_v54 = vpop.f32.mrb[15].mxu1  ;;  %v1745_v55 = vpop.f32.mrb[17].mxu0  ;;  %v1188_v0 = vrot.slane %v1180_v47, %v2473_v23  ;;  %v1195_v57 = vrot.slane %v1181_v48, %v2473_v23 }
 0x4fe   : > { %v1177_v56 = vpop.f32.mrb[18].mxu0 }
 0x4ff   : > { %v1204_v58 = vrot.slane %v1196_v52, %v2473_v23  ;;  %v1211_v59 = vrot.slane %v1197_v53, %v2473_v23  ;;  %v1746_v60 = vpop.f32.mrb[19].mxu0 }
 0x501   : > { %v1212_v61 = vcombine.low %v1188_v0, %v1204_v58  ;;  %v1213_v62 = vcombine.high %v1188_v0, %v1204_v58  ;;  %v1228_v63 = vcombine.low %v1195_v57, %v1211_v59  ;;  %v1229_v1 = vcombine.high %v1195_v57, %v1211_v59 }
 0x503   : > { %v1220_v3 = vrot.slane %v1212_v61, %v2476_v27  ;;  %v1227_v4 = vrot.slane %v1213_v62, %v2476_v27  ;;  %v1236_v5 = vrot.slane %v1228_v63, %v2476_v27  ;;  %v1243_v6 = vrot.slane %v1229_v1, %v2476_v27 }
 0x505   : > { %v1248_v7 = vcombine.low %v1220_v3, %v1227_v4  ;;  %v1653_v8 = vcombine.high %v1220_v3, %v1227_v4  ;;  %v1264_v9 = vcombine.low %v1236_v5, %v1243_v6  ;;  %v1654_v10 = vcombine.high %v1236_v5, %v1243_v6 }
 0x507   : > { %v1255_v11 = vrot.slane %v1248_v7, %v2473_v23  ;;  %v1263_v12 = vrot.slane %v1653_v8, %v2473_v23  ;;  %v1271_v13 = vrot.slane %v1264_v9, %v2473_v23  ;;  %v1279_v14 = vrot.slane %v1654_v10, %v2473_v23 }
 0x509   : > { %v1281_v15 = vcombine.high %v1255_v11, %v1263_v12  ;;  %v1297_v16 = vcombine.high %v1271_v13, %v1279_v14  ;;  %v1280_v17 = vcombine.low %v1255_v11, %v1263_v12  ;;  %v1296_v18 = vcombine.low %v1271_v13, %v1279_v14 }
 0x50b   : > { %v1295_v19 = vrot.slane %v1281_v15, %v2476_v27  ;;  %v1311_v20 = vrot.slane %v1297_v16, %v2476_v27  ;;  %v1288_v21 = vrot.slane %v1280_v17, %v2476_v27  ;;  %v1304_v22 = vrot.slane %v1296_v18, %v2476_v27 }
 0x50d   : > { %v1314_v24 = vcombine.low %v1295_v19, %v1311_v20  ;;  %v1313_v25 = vcombine.high %v1288_v21, %v1304_v22  ;;  %v1315_v26 = vcombine.high %v1295_v19, %v1311_v20  ;;  %v1312_v28 = vcombine.low %v1288_v21, %v1304_v22 }
 0x50f   : > { %1321 = vrot.lane.b32.xlu1 %v1314_v24, %s2134_s9  ;;  %1317 = vrot.lane.b32.xlu0 %v1313_v25, %s2135_s13 }
 0x513   : > { %1325 = vrot.lane.b32.xlu1 %v1315_v26, %s2136_s15 }
 0x581   : > { %v1322_v23 = vpop.permute.xlu1 %1321  ;;  %v1318_v29 = vpop.permute.xlu0 %1317 }
 0x582   : > { %v1328_v30 = vsel %vm746_vm2, %v1312_v28, %v1318_v29 }
 0x583   : > { %v1330_v31 = vsel %vm1329_vm7, %v1328_v30, %v1322_v23 }
 0x585   : > { %v1326_v27 = vpop.permute.xlu1 %1325 }
 0x586   : > { %v1332_v32 = vsel %vm1331_vm8, %v1330_v31, %v1326_v27 }
 0x587   : > { %v1333_v33 = vpack.c.bf16 %v1332_v32, %v1332_v32 }
 0x589   : > { %1752 = vmatmul.mubr.msk.bf16.vlgmr.msra.gmra.mrb[16].mxu1 %vm525_vm1, %v1333_v33 }
 0x58a   : > { %2009 = shalt.err (!%p2006_p0)
}
 0x58b   : > { %s2010_s16 = scalar_lea.hbm %s2603_s7, 256  ;;  %s2014_s28 = scalar_lea.hbm %s2759_s26, 512 }
 0x58c   : > { %p2011_p2 = scmp.ne.s32.totalorder %s2603_s7, %s2010_s16  ;;  %p2015_p3 = scmp.lt.u32.totalorder %s2603_s7, %s2759_s26 }
 0x58d   : > { %p2016_p1 = scmp.lt.u32.totalorder %s2014_s28, %s2010_s16  ;;  %p2018_p10 = scmp.lt.u32.totalorder %s2010_s16, %s2603_s7 }
 0x58e   : > { %p2012_p9 = pnand %p2011_p2, %p2760_p13 }
 0x58f   : > { %p2017_p5 = por %p2016_p1, %p2015_p3 }
 0x590   : > { %p2013_p11 = pneg %p2012_p9 }
 0x591   : > { %p2019_p7 = por %p2018_p10, %p2017_p5 }
 0x593   : > { %p2020_p4 = pnand %p2019_p7, %p2013_p11 }
 0x595   : > { %2023 = shalt.err (!%p2020_p4)
}
 0x596   : > { %s2138_s19 = smov 64   ;;  %s2139_s9 = smov 4  }
 0x597   : > { %1766 = dma.vmem_to_hbm [thread:$0]  (%p2760_p13), %s2605_s25, 256, %s2603_s7, %s1407_s30, %s2138_s19, %s2138_s19, %s2139_s9  }
 0x598   : > { %s1638_s13 = sshll.u32 %s2427_s17, 3  ;;  %s2761_s27 = sld [smem:[#allocation27_spill]] }
 0x599   : > { %s1661_s20 = sshll.u32 %s2110_s12, 7  ;;  %s483_s23 = scalar_lea.vmem [#allocation10], %s1638_s13 }
 0x59a   : > { %s1421_s22 = sshll.u32 %s483_s23, 4  ;;  %s2762_s16 = sld [smem:[#allocation28_spill]]  ;;  %s2641_s22 = int_to_ptr.vmem [resolvable:$true] %s1421_s22 }
 0x59b   : > { %s1402_s12 = scalar_lea.sflag [#allocation4], %s2427_s17  ;;  %s2024_s25 = scalar_lea.vmem %s2641_s22, 128 }
 0x59c   : > { %p2025_p6 = scmp.ne.s32.totalorder %s2641_s22, %s2024_s25  ;;  %s2140_s7 = smov [#allocation10]  }
 0x59d   : > { %s2028_s30 = sshll.u32 %s2140_s7, 4  ;;  %s2029_s30 = int_to_ptr.vmem [resolvable:$false] %s2028_s30 }
 0x59e   : > { %v1655_v34 = vld [vmem:[%s2761_s27] ss:$0 sm:$0xff]  ;;  %p2026_p8 = pnand %p2025_p6, %p2760_p13  ;;  %s2030_s14 = scalar_lea.vmem %s2029_s30, 256 }
 0x59f   : > { %p2031_p0 = scmp.lt.s32.totalorder %s2641_s22, %s2029_s30  ;;  %p2032_p2 = scmp.lt.s32.totalorder %s2030_s14, %s2024_s25 }
 0x5a0   : > { %s2639_s24 = scalar_lea.hbm %s2762_s16, %s1661_s20  ;;  %p2027_p12 = pneg %p2026_p8 }
 0x5a1   : > { %p2033_p9 = por %p2032_p2, %p2031_p0 }
 0x5a3   : > { %p2034_p11 = pnand %p2033_p9, %p2027_p12 }
 0x65c   : > { %v1394_v35 = vpop.f32.mrb[16].mxu1 }
 0x65d   : > { %v1395_v36 = vadd.f32 %v1655_v34, %v1394_v35  ;;  %v1753_v37 = vpop.f32.mrb[17].mxu1 }
 0x65e   : > { %v1397_v38 = vpop.f32.mrb[18].mxu1 }
 0x65f   : > { %v1754_v39 = vpop.f32.mrb[19].mxu1  ;;  %1400 = vst.msk [vmem:[%s483_s23] sm:$0xff] %vm525_vm1, %v1395_v36 }
 0x660   : > { %2037 = shalt.err (!%p2034_p11)
}
 0x661   : > { %s2038_s17 = scalar_lea.hbm %s2639_s24, 128  ;;  %s2042_s18 = scalar_lea.hbm %s2762_s16, 256 }
 0x662   : > { %p2039_p3 = scmp.ne.s32.totalorder %s2639_s24, %s2038_s17  ;;  %p2043_p10 = scmp.lt.u32.totalorder %s2639_s24, %s2762_s16 }
 0x663   : > { %p2044_p7 = scmp.lt.u32.totalorder %s2042_s18, %s2038_s17  ;;  %p2046_p6 = scmp.lt.u32.totalorder %s2038_s17, %s2639_s24 }
 0x664   : > { %p2040_p1 = pnand %p2039_p3, %p2760_p13 }
 0x665   : > { %p2045_p4 = por %p2044_p7, %p2043_p10 }
 0x666   : > { %p2041_p5 = pneg %p2040_p1 }
 0x667   : > { %p2047_p8 = por %p2046_p6, %p2045_p4 }
 0x669   : > { %p2048_p12 = pnand %p2047_p8, %p2041_p5 }
 0x66b   : > { %2051 = shalt.err (!%p2048_p12)
}
 0x66c   : > { %1765 = dma.vmem_to_hbm [thread:$0]  (%p2760_p13), %s2641_s22, 128, %s2639_s24, %s1402_s12  }
 0x66d PF: > { %s2763_s13 = sld [smem:[#allocation18_spill]]  ;;  %s2764_s15 = sld [smem:[#allocation25_spill]] }
 0x66e   : > { %s2765_s29 = sld [smem:[#allocation21_spill]] }
 0x673   : > { %s1450_s27 = sand.u32 1, %s2763_s13   ;;  %p2766_p0 = scmp.ne.s32.totalorder %s2764_s15, 0 }
 0x674   : > { %p2767_p2 = scmp.ge.s32.totalorder %s2765_s29, 2  ;;  %s1451_s20 = scalar_lea.sflag [#allocation4], %s1450_s27 }
 0x676   : > { %p1784_p9 = pnand %p2767_p2, %p2766_p0 }
 0x678   : > { %2089 = dma.done.wait (!%p1784_p9), %s1451_s20, 128  }
 0x679   : > { %2091 = vsyncadd (!%p1784_p9), %s1451_s20, 4294967168  ;;  %s1460_s23 = scalar_lea.sflag [#allocation12], %s1450_s27 }
 0x67a   : > { %2093 = dma.done.wait (!%p1784_p9), %s1460_s23, 256  }
 0x67b   : > { %2095 = vsyncadd (!%p1784_p9), %s1460_s23, 4294967040  ;;  %s33_s14 = sadd.s32 1, %s2765_s29   ;;  %s2768_s21 = sld [smem:[#allocation19_spill]] }
 0x67c   : > { %p30_p11 = scmp.ge.s32.totalorder %s33_s14, 4   ;;  %s2769_s11 = sld [smem:[#allocation23_spill]] }
 0x67d   : > { %s2770_s12 = sld [smem:[#allocation20_spill]]  ;;  %s2771_s13 = sld [smem:[#allocation22_spill]] }
 0x67e   : > { %s2772_s30 = smov %s2102_s10  ;;  %32 = sbr.rel (!%p30_p11) target bundleno = 16 (0x10), region = 145 }
 0x681   : > { %s2773_s10 = smov %s2768_s21 }
 0x685   :  { %1465 = vsyncpa [#allocation3], 1 }
 0x686   :  { %1467 = vsyncpa [#allocation3 + $0x1], 1 }
 0x687   :  { %1468 = vsyncpa [#allocation6], 1 }
 0x688   :  { %1470 = vsyncpa [#allocation6 + $0x1], 1 }
 0x689   :  { %1471 = vsyncpa [#allocation9], 1 }
 0x68a   :  { %1472 = vsyncpa [#allocation4], 1 }
 0x68b   :  { %1474 = vsyncpa [#allocation4 + $0x1], 1 }
 0x68c   :  { %1475 = vsyncpa [#allocation12], 1 }
 0x68d   :  { %1477 = vsyncpa [#allocation12 + $0x1], 1 }

</bundles_post_ra>
